<compile_context>
chip_gen: v5e
topology: v5e:2x2
jax: 0.10.0
libtpu: 0.0.40
codegen_flags: <defaults>
</compile_context>

<pallas_src>
import numpy as np

import jax
import jax.numpy as jnp
from jax.experimental import pallas as pl
from jax.experimental.pallas import tpu as pltpu

SEQ_LENGTH = 60
N_FEATURES = 1
KSIZE, STRIDE, PAD = 4, 2, 1
BN_EPS = 1e-5

C1, C2, C3 = 64, 128, 256


def _conv_out_len(L):
    return (L + 2 * PAD - KSIZE) // STRIDE + 1


L1 = _conv_out_len(SEQ_LENGTH)   # 30
L2 = _conv_out_len(L1)           # 15
L3 = _conv_out_len(L2)           # 7
LP2 = 2 * L2 + 2                 # 32: padded conv-2 input rows per sequence
LP3 = 2 * L3 + 2                 # 16: padded conv-3 input rows per sequence
KP1 = 8                          # conv-1 contraction (K*C_in = 4) zero-padded to 8


def _leaky_relu(y):
    return jnp.where(y > 0, y, 0.2 * y)


# ----------------------------------------------------------------------------
# The single fused kernel (one batch block of `tb` sequences per grid step).
# ----------------------------------------------------------------------------
def _make_kernel(tb):
    def kernel(xp_ref, w1_ref, b1_ref, w2_ref, b2_ref, w3_ref, b3_ref,
               wfc_ref, bfc_ref, o_ref, pad2_ref, col2_ref, pad3_ref, col3_ref):
        f32, bf16 = jnp.float32, jnp.bfloat16

        # ---- Conv1d(1 -> 64) + LeakyReLU: one bf16 MXU matmul over the im2col ----
        h1 = jnp.dot(xp_ref[...].astype(bf16), w1_ref[...],
                     preferred_element_type=f32)
        h1 = _leaky_relu(h1 + b1_ref[...])                      # (tb*30, 64) f32
        # Dropout(0.25): identity in eval mode.

        # ---- Conv1d(64 -> 128) + BN(folded) + LeakyReLU ---------------------------
        # Patch gather = data movement only: zero-padded contiguous writes, then
        # stride-2 sublane reads building the (tb*15, 4*64) im2col in bf16.
        pad2_ref[...] = jnp.zeros_like(pad2_ref)
        for b in range(tb):
            pad2_ref[b * LP2 + 1:b * LP2 + 1 + L1, :] = h1[b * L1:(b + 1) * L1, :]
        for b in range(tb):
            for k in range(KSIZE):
                col2_ref[b * L2:(b + 1) * L2, k * C1:(k + 1) * C1] = (
                    pad2_ref[pl.ds(b * LP2 + k, L2, stride=2), :].astype(bf16))
        h2 = jnp.dot(col2_ref[...], w2_ref[...], preferred_element_type=f32)
        h2 = _leaky_relu(h2 + b2_ref[...])                      # (tb*15, 128) f32

        # ---- Conv1d(128 -> 256) + BN(folded) + LeakyReLU --------------------------
        pad3_ref[...] = jnp.zeros_like(pad3_ref)
        for b in range(tb):
            pad3_ref[b * LP3 + 1:b * LP3 + 1 + L2, :] = h2[b * L2:(b + 1) * L2, :]
        for b in range(tb):
            for k in range(KSIZE):
                col3_ref[b * L3:(b + 1) * L3, k * C2:(k + 1) * C2] = (
                    pad3_ref[pl.ds(b * LP3 + k, L3, stride=2), :].astype(bf16))
        h3 = jnp.dot(col3_ref[...], w3_ref[...], preferred_element_type=f32)
        h3 = _leaky_relu(h3 + b3_ref[...])                      # (tb*7, 256) f32

        # ---- Flatten + Linear(256*7 -> 1) + Sigmoid: VPU mul + XLU reductions -----
        wfc = wfc_ref[...]                                       # (7, 256)
        bfc = bfc_ref[0, 0]                                      # SMEM scalar
        for b in range(tb):
            prod = h3[b * L3:(b + 1) * L3, :] * wfc
            v = jnp.sum(jnp.sum(prod, axis=1, keepdims=True), axis=0, keepdims=True)
            v = v + bfc
            o_ref[b:b + 1, :] = 1.0 / (1.0 + jnp.exp(-v))

    return kernel


def _pick_block(batch):
    for tb in (16, 8):
        if batch % tb == 0:
            return tb
    return batch


# ----------------------------------------------------------------------------
# Parameter init (PyTorch-style uniform fan-in), raw f32 / torch-like layouts.
# ----------------------------------------------------------------------------
def init_params(key):
    k1, k2, k3, k4 = jax.random.split(key, 4)

    def conv_init(k, c_in, c_out):
        kw, kb = jax.random.split(k)
        bound = 1.0 / np.sqrt(c_in * KSIZE)
        w = jax.random.uniform(kw, (KSIZE, c_in, c_out), jnp.float32, -bound, bound)
        b = jax.random.uniform(kb, (c_out,), jnp.float32, -bound, bound)
        return w, b

    w1, b1 = conv_init(k1, N_FEATURES, C1)
    w2, b2 = conv_init(k2, C1, C2)
    w3, b3 = conv_init(k3, C2, C3)

    kfw, kfb = jax.random.split(k4)
    bound_fc = 1.0 / np.sqrt(C3 * L3)
    # FC weight stored as (L3, C3): wfc[l, c] == torch_fc_weight[0, c*L3 + l]
    # (PyTorch's flatten(B, C, L) order absorbed into the layout; importing trained
    #  torch weights would require that reshuffle).
    wfc = jax.random.uniform(kfw, (L3, C3), jnp.float32, -bound_fc, bound_fc)
    bfc = jax.random.uniform(kfb, (1, 1), jnp.float32, -bound_fc, bound_fc)

    return {"w1": w1, "b1": b1, "w2": w2, "b2": b2, "w3": w3, "b3": b3,
            "wfc": wfc, "bfc": bfc}


# ----------------------------------------------------------------------------
# Forward pass (mirrors Discriminator.forward): x is (B, seq_length, n_features).
# ----------------------------------------------------------------------------
def discriminator_forward(x, params):
    B, L, C = x.shape
    assert L == SEQ_LENGTH and C == N_FEATURES

    # --- kernel-layout params: eval-mode BN folded, (K*C_in, C_out) bf16 weights ---
    bn_s = float(1.0 / np.sqrt(1.0 + BN_EPS))   # gamma=1, beta=0, mean=0, var=1
    w1 = jnp.pad(params["w1"].reshape(KSIZE * N_FEATURES, C1),
                 ((0, KP1 - KSIZE * N_FEATURES), (0, 0))).astype(jnp.bfloat16)
    w2 = (params["w2"] * bn_s).reshape(KSIZE * C1, C2).astype(jnp.bfloat16)
    w3 = (params["w3"] * bn_s).reshape(KSIZE * C2, C3).astype(jnp.bfloat16)
    b1 = params["b1"].reshape(1, C1)
    b2 = (params["b2"] * bn_s).reshape(1, C2)
    b3 = (params["b3"] * bn_s).reshape(1, C3)
    wfc = params["wfc"]                          # (7, 256) f32
    bfc = params["bfc"].reshape(1, 1)            # SMEM scalar

    # --- layer-1 im2col on the host (tiny, batch-linear): (B, 60) -> (B*30, 8) -----
    x1 = x.reshape(B, SEQ_LENGTH).astype(jnp.float32)
    xpad = jnp.pad(x1, ((0, 0), (PAD, PAD)))
    xp = jnp.stack([xpad[:, k:k + STRIDE * L1:STRIDE] for k in range(KSIZE)],
                   axis=-1)                      # (B, 30, 4)
    xp = jnp.pad(xp, ((0, 0), (0, 0), (0, KP1 - KSIZE)))
    xp = xp.reshape(B * L1, KP1)

    tb = _pick_block(B)
    grid = (B // tb,)
    const = lambda i: (0, 0)

    return pl.pallas_call(
        _make_kernel(tb),
        out_shape=jax.ShapeDtypeStruct((B, 1), jnp.float32),
        grid=grid,
        in_specs=[
            pl.BlockSpec((tb * L1, KP1), lambda i: (i, 0)),        # conv1 im2col
            pl.BlockSpec((KP1, C1), const),                        # w1
            pl.BlockSpec((1, C1), const),                          # b1
            pl.BlockSpec((KSIZE * C1, C2), const),                 # w2 (BN folded)
            pl.BlockSpec((1, C2), const),                          # b2
            pl.BlockSpec((KSIZE * C2, C3), const),                 # w3 (BN folded)
            pl.BlockSpec((1, C3), const),                          # b3
            pl.BlockSpec((L3, C3), const),                         # wfc
            pl.BlockSpec(memory_space=pltpu.MemorySpace.SMEM),     # bfc scalar
        ],
        out_specs=pl.BlockSpec((tb, 1), lambda i: (i, 0)),
        scratch_shapes=[
            pltpu.VMEM((tb * LP2, C1), jnp.float32),               # conv2 padded input
            pltpu.VMEM((tb * L2, KSIZE * C1), jnp.bfloat16),       # conv2 im2col
            pltpu.VMEM((tb * LP3, C2), jnp.float32),               # conv3 padded input
            pltpu.VMEM((tb * L3, KSIZE * C2), jnp.bfloat16),       # conv3 im2col
        ],
        compiler_params=pltpu.CompilerParams(
            dimension_semantics=("parallel",)),
    )(xp, w1, b1, w2, b2, w3, b3, wfc, bfc)


# ----------------------------------------------------------------------------
# Pure-JAX f32 reference mirroring Discriminator.forward (eval mode).
# ----------------------------------------------------------------------------
def reference_forward(x, params):
    hp = jax.lax.Precision.HIGHEST
    bn_s = float(1.0 / np.sqrt(1.0 + BN_EPS))
    h = jnp.transpose(x.astype(jnp.float32), (0, 2, 1))           # (B, 1, 60)

    def conv_block(h, w_kio, b, with_bn):
        w_oik = jnp.transpose(w_kio, (2, 1, 0))                   # (C_out, C_in, K)
        y = jax.lax.conv_general_dilated(
            h, w_oik, window_strides=(STRIDE,), padding=[(PAD, PAD)],
            dimension_numbers=("NCH", "OIH", "NCH"), precision=hp)
        y = y + b.reshape(1, -1, 1)
        if with_bn:
            y = y * bn_s           # eval-mode BatchNorm1d with default running stats
        return jnp.where(y > 0, y, 0.2 * y)

    h = conv_block(h, params["w1"], params["b1"], False)
    h = conv_block(h, params["w2"], params["b2"], True)
    h = conv_block(h, params["w3"], params["b3"], True)           # (B, 256, 7)
    logits = jnp.einsum("bcl,lc->b", h, params["wfc"], precision=hp)
    logits = logits[:, None] + params["bfc"]
    return jax.nn.sigmoid(logits)


if __name__ == "__main__":
    key = jax.random.PRNGKey(0)
    kx, kp = jax.random.split(key)

    B = 2   # seq_length=60 -> final conv length 7, matching the fc's 256*7 input
    x = jax.random.normal(kx, (B, SEQ_LENGTH, N_FEATURES), jnp.float32)
    params = init_params(kp)

    fwd = jax.jit(discriminator_forward)
    out = jax.block_until_ready(fwd(x, params))
    assert out.shape == (B, 1), out.shape
    assert bool(jnp.all(jnp.isfinite(out)))
    assert bool(jnp.all((out >= 0.0) & (out <= 1.0)))

    ref = jax.block_until_ready(reference_forward(x, params))
    max_err = float(jnp.max(jnp.abs(out - ref)))
    assert max_err < 4e-2, (max_err, out, ref)

    print("KERNEL_OK")
</pallas_src>

<mosaic_0001>
module attributes {stable_mosaic.version = 11 : i64} {
  func.func @kernel(%arg0: i32, %arg1: memref<60x8xf32, #tpu.memory_space<vmem>>, %arg2: memref<8x64xbf16, #tpu.memory_space<vmem>>, %arg3: memref<1x64xf32, #tpu.memory_space<vmem>>, %arg4: memref<256x128xbf16, #tpu.memory_space<vmem>>, %arg5: memref<1x128xf32, #tpu.memory_space<vmem>>, %arg6: memref<512x256xbf16, #tpu.memory_space<vmem>>, %arg7: memref<1x256xf32, #tpu.memory_space<vmem>>, %arg8: memref<7x256xf32, #tpu.memory_space<vmem>>, %arg9: memref<1x1xf32, #tpu.memory_space<smem>>, %arg10: memref<2x1xf32, #tpu.memory_space<vmem>>, %arg11: memref<64x64xf32, #tpu.memory_space<vmem>>, %arg12: memref<30x256xbf16, #tpu.memory_space<vmem>>, %arg13: memref<32x128xf32, #tpu.memory_space<vmem>>, %arg14: memref<14x512xbf16, #tpu.memory_space<vmem>>) attributes {dimension_semantics = [#tpu.dimension_semantics<parallel>], iteration_bounds = array<i64: 1>, scalar_prefetch = 0 : i64, scratch_operands = 4 : i64, tpu.core_type = #tpu.core_type<tc>, window_params = [{transform_indices = @transform_0, window_bounds = array<i64: 60, 8>}, {pipeline_mode = #tpu.pipeline_mode<synchronous>, transform_indices = @transform_1, window_bounds = array<i64: 8, 64>}, {pipeline_mode = #tpu.pipeline_mode<synchronous>, transform_indices = @transform_2, window_bounds = array<i64: 1, 64>}, {pipeline_mode = #tpu.pipeline_mode<synchronous>, transform_indices = @transform_3, window_bounds = array<i64: 256, 128>}, {pipeline_mode = #tpu.pipeline_mode<synchronous>, transform_indices = @transform_4, window_bounds = array<i64: 1, 128>}, {pipeline_mode = #tpu.pipeline_mode<synchronous>, transform_indices = @transform_5, window_bounds = array<i64: 512, 256>}, {pipeline_mode = #tpu.pipeline_mode<synchronous>, transform_indices = @transform_6, window_bounds = array<i64: 1, 256>}, {pipeline_mode = #tpu.pipeline_mode<synchronous>, transform_indices = @transform_7, window_bounds = array<i64: 7, 256>}, {transform_indices = @transform_8, window_bounds = array<i64: 1, 1>}, {transform_indices = @transform_9, window_bounds = array<i64: 2, 1>}]} {
    %c0 = arith.constant 0 : index
    %c0_0 = arith.constant 0 : index
    %0 = vector.load %arg1[%c0, %c0_0] : memref<60x8xf32, #tpu.memory_space<vmem>>, vector<60x8xf32>
    %1 = arith.truncf %0 : vector<60x8xf32> to vector<60x8xbf16>
    %c0_1 = arith.constant 0 : index
    %c0_2 = arith.constant 0 : index
    %2 = vector.load %arg2[%c0_1, %c0_2] : memref<8x64xbf16, #tpu.memory_space<vmem>>, vector<8x64xbf16>
    %cst = arith.constant dense<0.000000e+00> : vector<60x64xf32>
    %3 = tpu.matmul %1, %2, %cst {dimension_numbers = #tpu.dot_dimension_numbers<[1], [0], [0], [1], [0, 0, 1, 1], [], []>} : vector<60x8xbf16>, vector<8x64xbf16>, vector<60x64xf32> -> vector<60x64xf32>
    %c0_3 = arith.constant 0 : index
    %c0_4 = arith.constant 0 : index
    %4 = vector.load %arg3[%c0_3, %c0_4] : memref<1x64xf32, #tpu.memory_space<vmem>>, vector<1x64xf32>
    %5 = vector.broadcast %4 : vector<1x64xf32> to vector<60x64xf32>
    %6 = arith.addf %3, %5 : vector<60x64xf32>
    %cst_5 = arith.constant 0.000000e+00 : f32
    %7 = vector.broadcast %cst_5 : f32 to vector<60x64xf32>
    %8 = arith.cmpf ogt, %6, %7 : vector<60x64xf32>
    %cst_6 = arith.constant 2.000000e-01 : f32
    %9 = vector.broadcast %cst_6 : f32 to vector<60x64xf32>
    %10 = arith.mulf %9, %6 : vector<60x64xf32>
    %11 = arith.select %8, %6, %10 : vector<60x64xi1>, vector<60x64xf32>
    %cst_7 = arith.constant 0.000000e+00 : f32
    %12 = vector.broadcast %cst_7 : f32 to vector<64x64xf32>
    %c0_8 = arith.constant 0 : index
    %c0_9 = arith.constant 0 : index
    %13 = vector.load %arg11[%c0_8, %c0_9] : memref<64x64xf32, #tpu.memory_space<vmem>>, vector<64x64xf32>
    tpu.vector_store %arg11[%c0_8, %c0_9], %12 {strides = array<i32>} : memref<64x64xf32, #tpu.memory_space<vmem>>, vector<64x64xf32>,
    %14 = vector.extract_strided_slice %11 {offsets = [0, 0], sizes = [30, 64], strides = [1, 1]} : vector<60x64xf32> to vector<30x64xf32>
    %c1 = arith.constant 1 : index
    %c0_10 = arith.constant 0 : index
    %15 = vector.load %arg11[%c1, %c0_10] : memref<64x64xf32, #tpu.memory_space<vmem>>, vector<30x64xf32>
    tpu.vector_store %arg11[%c1, %c0_10], %14 {strides = array<i32>} : memref<64x64xf32, #tpu.memory_space<vmem>>, vector<30x64xf32>,
    %16 = vector.extract_strided_slice %11 {offsets = [30, 0], sizes = [30, 64], strides = [1, 1]} : vector<60x64xf32> to vector<30x64xf32>
    %c33 = arith.constant 33 : index
    %c0_11 = arith.constant 0 : index
    %17 = vector.load %arg11[%c33, %c0_11] : memref<64x64xf32, #tpu.memory_space<vmem>>, vector<30x64xf32>
    tpu.vector_store %arg11[%c33, %c0_11], %16 {strides = array<i32>} : memref<64x64xf32, #tpu.memory_space<vmem>>, vector<30x64xf32>,
    %c0_12 = arith.constant 0 : index
    %c0_13 = arith.constant 0 : index
    %18 = tpu.strided_load %arg11[%c0_12, %c0_13] {strides = array<i32: 2, 1>} : memref<64x64xf32, #tpu.memory_space<vmem>>, vector<15x64xf32>
    %19 = arith.truncf %18 : vector<15x64xf32> to vector<15x64xbf16>
    %c0_14 = arith.constant 0 : index
    %c0_15 = arith.constant 0 : index
    %20 = vector.load %arg12[%c0_14, %c0_15] : memref<30x256xbf16, #tpu.memory_space<vmem>>, vector<15x64xbf16>
    tpu.vector_store %arg12[%c0_14, %c0_15], %19 {strides = array<i32>} : memref<30x256xbf16, #tpu.memory_space<vmem>>, vector<15x64xbf16>,
    %c1_16 = arith.constant 1 : index
    %c0_17 = arith.constant 0 : index
    %21 = tpu.strided_load %arg11[%c1_16, %c0_17] {strides = array<i32: 2, 1>} : memref<64x64xf32, #tpu.memory_space<vmem>>, vector<15x64xf32>
    %22 = arith.truncf %21 : vector<15x64xf32> to vector<15x64xbf16>
    %c0_18 = arith.constant 0 : index
    %c64 = arith.constant 64 : index
    %23 = vector.load %arg12[%c0_18, %c64] : memref<30x256xbf16, #tpu.memory_space<vmem>>, vector<15x64xbf16>
    tpu.vector_store %arg12[%c0_18, %c64], %22 {strides = array<i32>} : memref<30x256xbf16, #tpu.memory_space<vmem>>, vector<15x64xbf16>,
    %c2 = arith.constant 2 : index
    %c0_19 = arith.constant 0 : index
    %24 = tpu.strided_load %arg11[%c2, %c0_19] {strides = array<i32: 2, 1>} : memref<64x64xf32, #tpu.memory_space<vmem>>, vector<15x64xf32>
    %25 = arith.truncf %24 : vector<15x64xf32> to vector<15x64xbf16>
    %c0_20 = arith.constant 0 : index
    %c128 = arith.constant 128 : index
    %26 = vector.load %arg12[%c0_20, %c128] : memref<30x256xbf16, #tpu.memory_space<vmem>>, vector<15x64xbf16>
    tpu.vector_store %arg12[%c0_20, %c128], %25 {strides = array<i32>} : memref<30x256xbf16, #tpu.memory_space<vmem>>, vector<15x64xbf16>,
    %c3 = arith.constant 3 : index
    %c0_21 = arith.constant 0 : index
    %27 = tpu.strided_load %arg11[%c3, %c0_21] {strides = array<i32: 2, 1>} : memref<64x64xf32, #tpu.memory_space<vmem>>, vector<15x64xf32>
    %28 = arith.truncf %27 : vector<15x64xf32> to vector<15x64xbf16>
    %c0_22 = arith.constant 0 : index
    %c192 = arith.constant 192 : index
    %29 = vector.load %arg12[%c0_22, %c192] : memref<30x256xbf16, #tpu.memory_space<vmem>>, vector<15x64xbf16>
    tpu.vector_store %arg12[%c0_22, %c192], %28 {strides = array<i32>} : memref<30x256xbf16, #tpu.memory_space<vmem>>, vector<15x64xbf16>,
    %c32 = arith.constant 32 : index
    %c0_23 = arith.constant 0 : index
    %30 = tpu.strided_load %arg11[%c32, %c0_23] {strides = array<i32: 2, 1>} : memref<64x64xf32, #tpu.memory_space<vmem>>, vector<15x64xf32>
    %31 = arith.truncf %30 : vector<15x64xf32> to vector<15x64xbf16>
    %c15 = arith.constant 15 : index
    %c0_24 = arith.constant 0 : index
    %32 = vector.load %arg12[%c15, %c0_24] : memref<30x256xbf16, #tpu.memory_space<vmem>>, vector<15x64xbf16>
    tpu.vector_store %arg12[%c15, %c0_24], %31 {strides = array<i32>} : memref<30x256xbf16, #tpu.memory_space<vmem>>, vector<15x64xbf16>,
    %c33_25 = arith.constant 33 : index
    %c0_26 = arith.constant 0 : index
    %33 = tpu.strided_load %arg11[%c33_25, %c0_26] {strides = array<i32: 2, 1>} : memref<64x64xf32, #tpu.memory_space<vmem>>, vector<15x64xf32>
    %34 = arith.truncf %33 : vector<15x64xf32> to vector<15x64xbf16>
    %c15_27 = arith.constant 15 : index
    %c64_28 = arith.constant 64 : index
    %35 = vector.load %arg12[%c15_27, %c64_28] : memref<30x256xbf16, #tpu.memory_space<vmem>>, vector<15x64xbf16>
    tpu.vector_store %arg12[%c15_27, %c64_28], %34 {strides = array<i32>} : memref<30x256xbf16, #tpu.memory_space<vmem>>, vector<15x64xbf16>,
    %c34 = arith.constant 34 : index
    %c0_29 = arith.constant 0 : index
    %36 = tpu.strided_load %arg11[%c34, %c0_29] {strides = array<i32: 2, 1>} : memref<64x64xf32, #tpu.memory_space<vmem>>, vector<15x64xf32>
    %37 = arith.truncf %36 : vector<15x64xf32> to vector<15x64xbf16>
    %c15_30 = arith.constant 15 : index
    %c128_31 = arith.constant 128 : index
    %38 = vector.load %arg12[%c15_30, %c128_31] : memref<30x256xbf16, #tpu.memory_space<vmem>>, vector<15x64xbf16>
    tpu.vector_store %arg12[%c15_30, %c128_31], %37 {strides = array<i32>} : memref<30x256xbf16, #tpu.memory_space<vmem>>, vector<15x64xbf16>,
    %c35 = arith.constant 35 : index
    %c0_32 = arith.constant 0 : index
    %39 = tpu.strided_load %arg11[%c35, %c0_32] {strides = array<i32: 2, 1>} : memref<64x64xf32, #tpu.memory_space<vmem>>, vector<15x64xf32>
    %40 = arith.truncf %39 : vector<15x64xf32> to vector<15x64xbf16>
    %c15_33 = arith.constant 15 : index
    %c192_34 = arith.constant 192 : index
    %41 = vector.load %arg12[%c15_33, %c192_34] : memref<30x256xbf16, #tpu.memory_space<vmem>>, vector<15x64xbf16>
    tpu.vector_store %arg12[%c15_33, %c192_34], %40 {strides = array<i32>} : memref<30x256xbf16, #tpu.memory_space<vmem>>, vector<15x64xbf16>,
    %c0_35 = arith.constant 0 : index
    %c0_36 = arith.constant 0 : index
    %42 = vector.load %arg12[%c0_35, %c0_36] : memref<30x256xbf16, #tpu.memory_space<vmem>>, vector<30x256xbf16>
    %c0_37 = arith.constant 0 : index
    %c0_38 = arith.constant 0 : index
    %43 = vector.load %arg4[%c0_37, %c0_38] : memref<256x128xbf16, #tpu.memory_space<vmem>>, vector<256x128xbf16>
    %cst_39 = arith.constant dense<0.000000e+00> : vector<30x128xf32>
    %44 = tpu.matmul %42, %43, %cst_39 {dimension_numbers = #tpu.dot_dimension_numbers<[1], [0], [0], [1], [0, 0, 1, 1], [], []>} : vector<30x256xbf16>, vector<256x128xbf16>, vector<30x128xf32> -> vector<30x128xf32>
    %c0_40 = arith.constant 0 : index
    %c0_41 = arith.constant 0 : index
    %45 = vector.load %arg5[%c0_40, %c0_41] : memref<1x128xf32, #tpu.memory_space<vmem>>, vector<1x128xf32>
    %46 = vector.broadcast %45 : vector<1x128xf32> to vector<30x128xf32>
    %47 = arith.addf %44, %46 : vector<30x128xf32>
    %cst_42 = arith.constant 0.000000e+00 : f32
    %48 = vector.broadcast %cst_42 : f32 to vector<30x128xf32>
    %49 = arith.cmpf ogt, %47, %48 : vector<30x128xf32>
    %cst_43 = arith.constant 2.000000e-01 : f32
    %50 = vector.broadcast %cst_43 : f32 to vector<30x128xf32>
    %51 = arith.mulf %50, %47 : vector<30x128xf32>
    %52 = arith.select %49, %47, %51 : vector<30x128xi1>, vector<30x128xf32>
    %cst_44 = arith.constant 0.000000e+00 : f32
    %53 = vector.broadcast %cst_44 : f32 to vector<32x128xf32>
    %c0_45 = arith.constant 0 : index
    %c0_46 = arith.constant 0 : index
    %54 = vector.load %arg13[%c0_45, %c0_46] : memref<32x128xf32, #tpu.memory_space<vmem>>, vector<32x128xf32>
    tpu.vector_store %arg13[%c0_45, %c0_46], %53 {strides = array<i32>} : memref<32x128xf32, #tpu.memory_space<vmem>>, vector<32x128xf32>,
    %55 = vector.extract_strided_slice %52 {offsets = [0, 0], sizes = [15, 128], strides = [1, 1]} : vector<30x128xf32> to vector<15x128xf32>
    %c1_47 = arith.constant 1 : index
    %c0_48 = arith.constant 0 : index
    %56 = vector.load %arg13[%c1_47, %c0_48] : memref<32x128xf32, #tpu.memory_space<vmem>>, vector<15x128xf32>
    tpu.vector_store %arg13[%c1_47, %c0_48], %55 {strides = array<i32>} : memref<32x128xf32, #tpu.memory_space<vmem>>, vector<15x128xf32>,
    %57 = vector.extract_strided_slice %52 {offsets = [15, 0], sizes = [15, 128], strides = [1, 1]} : vector<30x128xf32> to vector<15x128xf32>
    %c17 = arith.constant 17 : index
    %c0_49 = arith.constant 0 : index
    %58 = vector.load %arg13[%c17, %c0_49] : memref<32x128xf32, #tpu.memory_space<vmem>>, vector<15x128xf32>
    tpu.vector_store %arg13[%c17, %c0_49], %57 {strides = array<i32>} : memref<32x128xf32, #tpu.memory_space<vmem>>, vector<15x128xf32>,
    %c0_50 = arith.constant 0 : index
    %c0_51 = arith.constant 0 : index
    %59 = tpu.strided_load %arg13[%c0_50, %c0_51] {strides = array<i32: 2, 1>} : memref<32x128xf32, #tpu.memory_space<vmem>>, vector<7x128xf32>
    %60 = arith.truncf %59 : vector<7x128xf32> to vector<7x128xbf16>
    %c0_52 = arith.constant 0 : index
    %c0_53 = arith.constant 0 : index
    %61 = vector.load %arg14[%c0_52, %c0_53] : memref<14x512xbf16, #tpu.memory_space<vmem>>, vector<7x128xbf16>
    tpu.vector_store %arg14[%c0_52, %c0_53], %60 {strides = array<i32>} : memref<14x512xbf16, #tpu.memory_space<vmem>>, vector<7x128xbf16>,
    %c1_54 = arith.constant 1 : index
    %c0_55 = arith.constant 0 : index
    %62 = tpu.strided_load %arg13[%c1_54, %c0_55] {strides = array<i32: 2, 1>} : memref<32x128xf32, #tpu.memory_space<vmem>>, vector<7x128xf32>
    %63 = arith.truncf %62 : vector<7x128xf32> to vector<7x128xbf16>
    %c0_56 = arith.constant 0 : index
    %c128_57 = arith.constant 128 : index
    %64 = vector.load %arg14[%c0_56, %c128_57] : memref<14x512xbf16, #tpu.memory_space<vmem>>, vector<7x128xbf16>
    tpu.vector_store %arg14[%c0_56, %c128_57], %63 {strides = array<i32>} : memref<14x512xbf16, #tpu.memory_space<vmem>>, vector<7x128xbf16>,
    %c2_58 = arith.constant 2 : index
    %c0_59 = arith.constant 0 : index
    %65 = tpu.strided_load %arg13[%c2_58, %c0_59] {strides = array<i32: 2, 1>} : memref<32x128xf32, #tpu.memory_space<vmem>>, vector<7x128xf32>
    %66 = arith.truncf %65 : vector<7x128xf32> to vector<7x128xbf16>
    %c0_60 = arith.constant 0 : index
    %c256 = arith.constant 256 : index
    %67 = vector.load %arg14[%c0_60, %c256] : memref<14x512xbf16, #tpu.memory_space<vmem>>, vector<7x128xbf16>
    tpu.vector_store %arg14[%c0_60, %c256], %66 {strides = array<i32>} : memref<14x512xbf16, #tpu.memory_space<vmem>>, vector<7x128xbf16>,
    %c3_61 = arith.constant 3 : index
    %c0_62 = arith.constant 0 : index
    %68 = tpu.strided_load %arg13[%c3_61, %c0_62] {strides = array<i32: 2, 1>} : memref<32x128xf32, #tpu.memory_space<vmem>>, vector<7x128xf32>
    %69 = arith.truncf %68 : vector<7x128xf32> to vector<7x128xbf16>
    %c0_63 = arith.constant 0 : index
    %c384 = arith.constant 384 : index
    %70 = vector.load %arg14[%c0_63, %c384] : memref<14x512xbf16, #tpu.memory_space<vmem>>, vector<7x128xbf16>
    tpu.vector_store %arg14[%c0_63, %c384], %69 {strides = array<i32>} : memref<14x512xbf16, #tpu.memory_space<vmem>>, vector<7x128xbf16>,
    %c16 = arith.constant 16 : index
    %c0_64 = arith.constant 0 : index
    %71 = tpu.strided_load %arg13[%c16, %c0_64] {strides = array<i32: 2, 1>} : memref<32x128xf32, #tpu.memory_space<vmem>>, vector<7x128xf32>
    %72 = arith.truncf %71 : vector<7x128xf32> to vector<7x128xbf16>
    %c7 = arith.constant 7 : index
    %c0_65 = arith.constant 0 : index
    %73 = vector.load %arg14[%c7, %c0_65] : memref<14x512xbf16, #tpu.memory_space<vmem>>, vector<7x128xbf16>
    tpu.vector_store %arg14[%c7, %c0_65], %72 {strides = array<i32>} : memref<14x512xbf16, #tpu.memory_space<vmem>>, vector<7x128xbf16>,
    %c17_66 = arith.constant 17 : index
    %c0_67 = arith.constant 0 : index
    %74 = tpu.strided_load %arg13[%c17_66, %c0_67] {strides = array<i32: 2, 1>} : memref<32x128xf32, #tpu.memory_space<vmem>>, vector<7x128xf32>
    %75 = arith.truncf %74 : vector<7x128xf32> to vector<7x128xbf16>
    %c7_68 = arith.constant 7 : index
    %c128_69 = arith.constant 128 : index
    %76 = vector.load %arg14[%c7_68, %c128_69] : memref<14x512xbf16, #tpu.memory_space<vmem>>, vector<7x128xbf16>
    tpu.vector_store %arg14[%c7_68, %c128_69], %75 {strides = array<i32>} : memref<14x512xbf16, #tpu.memory_space<vmem>>, vector<7x128xbf16>,
    %c18 = arith.constant 18 : index
    %c0_70 = arith.constant 0 : index
    %77 = tpu.strided_load %arg13[%c18, %c0_70] {strides = array<i32: 2, 1>} : memref<32x128xf32, #tpu.memory_space<vmem>>, vector<7x128xf32>
    %78 = arith.truncf %77 : vector<7x128xf32> to vector<7x128xbf16>
    %c7_71 = arith.constant 7 : index
    %c256_72 = arith.constant 256 : index
    %79 = vector.load %arg14[%c7_71, %c256_72] : memref<14x512xbf16, #tpu.memory_space<vmem>>, vector<7x128xbf16>
    tpu.vector_store %arg14[%c7_71, %c256_72], %78 {strides = array<i32>} : memref<14x512xbf16, #tpu.memory_space<vmem>>, vector<7x128xbf16>,
    %c19 = arith.constant 19 : index
    %c0_73 = arith.constant 0 : index
    %80 = tpu.strided_load %arg13[%c19, %c0_73] {strides = array<i32: 2, 1>} : memref<32x128xf32, #tpu.memory_space<vmem>>, vector<7x128xf32>
    %81 = arith.truncf %80 : vector<7x128xf32> to vector<7x128xbf16>
    %c7_74 = arith.constant 7 : index
    %c384_75 = arith.constant 384 : index
    %82 = vector.load %arg14[%c7_74, %c384_75] : memref<14x512xbf16, #tpu.memory_space<vmem>>, vector<7x128xbf16>
    tpu.vector_store %arg14[%c7_74, %c384_75], %81 {strides = array<i32>} : memref<14x512xbf16, #tpu.memory_space<vmem>>, vector<7x128xbf16>,
    %c0_76 = arith.constant 0 : index
    %c0_77 = arith.constant 0 : index
    %83 = vector.load %arg14[%c0_76, %c0_77] : memref<14x512xbf16, #tpu.memory_space<vmem>>, vector<14x512xbf16>
    %c0_78 = arith.constant 0 : index
    %c0_79 = arith.constant 0 : index
    %84 = vector.load %arg6[%c0_78, %c0_79] : memref<512x256xbf16, #tpu.memory_space<vmem>>, vector<512x256xbf16>
    %cst_80 = arith.constant dense<0.000000e+00> : vector<14x256xf32>
    %85 = tpu.matmul %83, %84, %cst_80 {dimension_numbers = #tpu.dot_dimension_numbers<[1], [0], [0], [1], [0, 0, 1, 1], [], []>} : vector<14x512xbf16>, vector<512x256xbf16>, vector<14x256xf32> -> vector<14x256xf32>
    %c0_81 = arith.constant 0 : index
    %c0_82 = arith.constant 0 : index
    %86 = vector.load %arg7[%c0_81, %c0_82] : memref<1x256xf32, #tpu.memory_space<vmem>>, vector<1x256xf32>
    %87 = vector.broadcast %86 : vector<1x256xf32> to vector<14x256xf32>
    %88 = arith.addf %85, %87 : vector<14x256xf32>
    %cst_83 = arith.constant 0.000000e+00 : f32
    %89 = vector.broadcast %cst_83 : f32 to vector<14x256xf32>
    %90 = arith.cmpf ogt, %88, %89 : vector<14x256xf32>
    %cst_84 = arith.constant 2.000000e-01 : f32
    %91 = vector.broadcast %cst_84 : f32 to vector<14x256xf32>
    %92 = arith.mulf %91, %88 : vector<14x256xf32>
    %93 = arith.select %90, %88, %92 : vector<14x256xi1>, vector<14x256xf32>
    %c0_85 = arith.constant 0 : index
    %c0_86 = arith.constant 0 : index
    %94 = vector.load %arg8[%c0_85, %c0_86] : memref<7x256xf32, #tpu.memory_space<vmem>>, vector<7x256xf32>
    %c0_87 = arith.constant 0 : index
    %c0_88 = arith.constant 0 : index
    %95 = memref.load %arg9[%c0_87, %c0_88] : memref<1x1xf32, #tpu.memory_space<smem>>
    %96 = vector.extract_strided_slice %93 {offsets = [0, 0], sizes = [7, 256], strides = [1, 1]} : vector<14x256xf32> to vector<7x256xf32>
    %97 = arith.mulf %96, %94 : vector<7x256xf32>
    %cst_89 = arith.constant dense<0.000000e+00> : vector<7xf32>
    %98 = vector.multi_reduction <add>, %97, %cst_89 [1] : vector<7x256xf32> to vector<7xf32>
    %99 = vector.shape_cast %98 : vector<7xf32> to vector<7x1xf32>
    %cst_90 = arith.constant dense<0.000000e+00> : vector<1xf32>
    %100 = vector.multi_reduction <add>, %99, %cst_90 [0] : vector<7x1xf32> to vector<1xf32>
    %101 = vector.shape_cast %100 : vector<1xf32> to vector<1x1xf32>
    %102 = vector.broadcast %95 : f32 to vector<1x1xf32>
    %103 = arith.addf %101, %102 : vector<1x1xf32>
    %cst_91 = arith.constant 0.000000e+00 : f32
    %104 = vector.broadcast %cst_91 : f32 to vector<1x1xf32>
    %105 = arith.subf %104, %103 : vector<1x1xf32>
    %106 = math.exp %105 : vector<1x1xf32>
    %cst_92 = arith.constant 1.000000e+00 : f32
    %107 = vector.broadcast %cst_92 : f32 to vector<1x1xf32>
    %108 = arith.addf %107, %106 : vector<1x1xf32>
    %cst_93 = arith.constant 1.000000e+00 : f32
    %109 = vector.broadcast %cst_93 : f32 to vector<1x1xf32>
    %110 = arith.divf %109, %108 : vector<1x1xf32>
    %c0_94 = arith.constant 0 : index
    %c0_95 = arith.constant 0 : index
    %111 = vector.load %arg10[%c0_94, %c0_95] : memref<2x1xf32, #tpu.memory_space<vmem>>, vector<1x1xf32>
    tpu.vector_store %arg10[%c0_94, %c0_95], %110 {strides = array<i32>} : memref<2x1xf32, #tpu.memory_space<vmem>>, vector<1x1xf32>,
    %112 = vector.extract_strided_slice %93 {offsets = [7, 0], sizes = [7, 256], strides = [1, 1]} : vector<14x256xf32> to vector<7x256xf32>
    %113 = arith.mulf %112, %94 : vector<7x256xf32>
    %cst_96 = arith.constant dense<0.000000e+00> : vector<7xf32>
    %114 = vector.multi_reduction <add>, %113, %cst_96 [1] : vector<7x256xf32> to vector<7xf32>
    %115 = vector.shape_cast %114 : vector<7xf32> to vector<7x1xf32>
    %cst_97 = arith.constant dense<0.000000e+00> : vector<1xf32>
    %116 = vector.multi_reduction <add>, %115, %cst_97 [0] : vector<7x1xf32> to vector<1xf32>
    %117 = vector.shape_cast %116 : vector<1xf32> to vector<1x1xf32>
    %118 = vector.broadcast %95 : f32 to vector<1x1xf32>
    %119 = arith.addf %117, %118 : vector<1x1xf32>
    %cst_98 = arith.constant 0.000000e+00 : f32
    %120 = vector.broadcast %cst_98 : f32 to vector<1x1xf32>
    %121 = arith.subf %120, %119 : vector<1x1xf32>
    %122 = math.exp %121 : vector<1x1xf32>
    %cst_99 = arith.constant 1.000000e+00 : f32
    %123 = vector.broadcast %cst_99 : f32 to vector<1x1xf32>
    %124 = arith.addf %123, %122 : vector<1x1xf32>
    %cst_100 = arith.constant 1.000000e+00 : f32
    %125 = vector.broadcast %cst_100 : f32 to vector<1x1xf32>
    %126 = arith.divf %125, %124 : vector<1x1xf32>
    %c1_101 = arith.constant 1 : index
    %c0_102 = arith.constant 0 : index
    %127 = vector.load %arg10[%c1_101, %c0_102] : memref<2x1xf32, #tpu.memory_space<vmem>>, vector<1x1xf32>
    tpu.vector_store %arg10[%c1_101, %c0_102], %126 {strides = array<i32>} : memref<2x1xf32, #tpu.memory_space<vmem>>, vector<1x1xf32>,
    return
  }
  func.func @transform_0(%arg0: i32) -> (i32, i32) {
    %c0_i32 = arith.constant 0 : i32
    %c0_i32_0 = arith.constant 0 : i32
    return %arg0, %c0_i32 : i32, i32
  }
  func.func @transform_1(%arg0: i32) -> (i32, i32) {
    %c0_i32 = arith.constant 0 : i32
    %c0_i32_0 = arith.constant 0 : i32
    %c0_i32_1 = arith.constant 0 : i32
    return %c0_i32, %c0_i32_0 : i32, i32
  }
  func.func @transform_2(%arg0: i32) -> (i32, i32) {
    %c0_i32 = arith.constant 0 : i32
    %c0_i32_0 = arith.constant 0 : i32
    %c0_i32_1 = arith.constant 0 : i32
    return %c0_i32, %c0_i32_0 : i32, i32
  }
  func.func @transform_3(%arg0: i32) -> (i32, i32) {
    %c0_i32 = arith.constant 0 : i32
    %c0_i32_0 = arith.constant 0 : i32
    %c0_i32_1 = arith.constant 0 : i32
    return %c0_i32, %c0_i32_0 : i32, i32
  }
  func.func @transform_4(%arg0: i32) -> (i32, i32) {
    %c0_i32 = arith.constant 0 : i32
    %c0_i32_0 = arith.constant 0 : i32
    %c0_i32_1 = arith.constant 0 : i32
    return %c0_i32, %c0_i32_0 : i32, i32
  }
  func.func @transform_5(%arg0: i32) -> (i32, i32) {
    %c0_i32 = arith.constant 0 : i32
    %c0_i32_0 = arith.constant 0 : i32
    %c0_i32_1 = arith.constant 0 : i32
    return %c0_i32, %c0_i32_0 : i32, i32
  }
  func.func @transform_6(%arg0: i32) -> (i32, i32) {
    %c0_i32 = arith.constant 0 : i32
    %c0_i32_0 = arith.constant 0 : i32
    %c0_i32_1 = arith.constant 0 : i32
    return %c0_i32, %c0_i32_0 : i32, i32
  }
  func.func @transform_7(%arg0: i32) -> (i32, i32) {
    %c0_i32 = arith.constant 0 : i32
    %c0_i32_0 = arith.constant 0 : i32
    %c0_i32_1 = arith.constant 0 : i32
    return %c0_i32, %c0_i32_0 : i32, i32
  }
  func.func @transform_8(%arg0: i32) -> (i32, i32) {
    %c0_i32 = arith.constant 0 : i32
    %c0_i32_0 = arith.constant 0 : i32
    %c0_i32_1 = arith.constant 0 : i32
    return %c0_i32, %c0_i32_0 : i32, i32
  }
  func.func @transform_9(%arg0: i32) -> (i32, i32) {
    %c0_i32 = arith.constant 0 : i32
    %c0_i32_0 = arith.constant 0 : i32
    return %arg0, %c0_i32 : i32, i32
  }
}

</mosaic_0001>

<bundles_post_ra>
// kernel: discriminator_forward.1
= control target key start
LH: loop header
LB: loop body
LE: loop exit
PB: predicated region body
PF: predicated region fallthrough
CT: control target
= control target key end

     0   :  { %vm64_vm0 = vcmask 1043456   ;;  %vm51_vm1 = vcmask 64512   ;;  %vm121_vm2 = vcmask 523264   ;;  %v1771_v14 = vmov 0.0   ;;  %v182_v44 = vld [vmem:[#allocation3 + $0xc] sm:$0xf]  ;;  %s2427_s1 = inlined_call_operand.vmem [shape: bf16[8,64], index: 1, kind: input, shape index: {}]   ;;  %s2428_s0 = inlined_call_operand.vmem [shape: f32[60,8], index: 0, kind: input, shape index: {}]   ;;  %s2429_s2 = inlined_call_operand.vmem [shape: f32[1,64], index: 2, kind: input, shape index: {}]   ;;  %s2430_s4 = inlined_call_operand.vmem [shape: f32[1,128], index: 4, kind: input, shape index: {}]   ;;  %s2431_s3 = inlined_call_operand.vmem [shape: bf16[256,128], index: 3, kind: input, shape index: {}]   ;;  %s2432_s5 = inlined_call_operand.vmem [shape: bf16[512,256], index: 5, kind: input, shape index: {}]   ;;  %s2433_s6 = inlined_call_operand.vmem [shape: f32[1,256], index: 6, kind: input, shape index: {}]   ;;  %s2434_s7 = inlined_call_operand.vmem [shape: f32[7,256], index: 7, kind: input, shape index: {}]   ;;  %s2435_s8 = inlined_call_operand.<no memory space> [shape: f32[1,1], index: 8, kind: input, shape index: {}]   ;;  %s2436_s9 = inlined_call_operand.vmem [shape: f32[2,1], index: 9, kind: output, shape index: {}]  }
   0x1   :  { %v46_v0 = vld [vmem:[%s2427_s1] sm:$0xf]  ;;  %v35_v3 = vld [vmem:[%s2428_s0 + $0x8] sm:$0xff]  ;;  %v36_v5 = vld [vmem:[%s2428_s0 + $0x10] sm:$0xff]  ;;  %122 = vst.msk [vmem:[#allocation2] sm:$0xff] %vm121_vm2, %v1771_v14  ;;  %vm140_vm6 = vcmask 519168  }
   0x2   :  { %v34_v1 = vld [vmem:[%s2428_s0] sm:$0xff]  ;;  %v66_v2 = vsel %vm64_vm0, %v46_v0, 0  ;;  %v37_v6 = vld [vmem:[%s2428_s0 + $0x18] sm:$0xff]  ;;  %v39_v9 = vld [vmem:[%s2428_s0 + $0x28] sm:$0xff]  ;;  %123 = vst.msk [vmem:[#allocation2 + $0x8] sm:$0xff] %vm121_vm2, %v1771_v14  ;;  %vm133_vm8 = vcmask 521216  }
   0x3   :  { %75 = vmatpush.bf16.msra.mxu0 %v66_v2  ;;  %v42_v4 = vpack.c.bf16 %v35_v3, %v34_v1  ;;  %v43_v7 = vpack.c.bf16 %v37_v6, %v36_v5  ;;  %v38_v8 = vld [vmem:[%s2428_s0 + $0x20] sm:$0xff]  ;;  %v40_v11 = vld [vmem:[%s2428_s0 + $0x30] sm:$0xff]  ;;  %v41_v12 = vld [vmem:[%s2428_s0 + $0x38] sm:$0xf]  ;;  %124 = vst.msk [vmem:[#allocation2 + $0x10] sm:$0xff] %vm121_vm2, %v1771_v14  ;;  %vm135_vm9 = vcmask 523270  }
   0x4   :  { %v44_v10 = vpack.c.bf16 %v39_v9, %v38_v8  ;;  %v45_v13 = vpack.c.bf16 %v41_v12, %v40_v11  ;;  %125 = vst.msk [vmem:[#allocation2 + $0x18] sm:$0xff] %vm121_vm2, %v1771_v14  ;;  %v1862_v15 = vld [vmem:[%s2429_s2] ss:$0 sm:$0xff]  ;;  %s1772_s2 = smov 64   ;;  %vm149_vm10 = vsmask.f32 3328 }
   0x5   :  { %126 = vst.msk [vmem:[#allocation2 + $0x20] sm:$0xff] %vm121_vm2, %v1771_v14  ;;  %vm150_vm12 = vmand %vm140_vm6, %vm149_vm10  ;;  %v151_v47 = vld [vmem:[#allocation3 + $0x8] sm:$0xf] }
   0x6   :  { %1310 = vmatmul.msk.bf16.vlgmr.msra.gmra.mxu0 %vm51_vm1, %v42_v4  ;;  %127 = vst.msk [vmem:[#allocation2 + $0x28] sm:$0xff] %vm121_vm2, %v1771_v14 }
   0x7   :  { %128 = vst.msk [vmem:[#allocation2 + $0x30] sm:$0xff] %vm121_vm2, %v1771_v14 }
   0x8   :  { %129 = vst.msk [vmem:[#allocation2 + $0x38] sm:$0xff] %vm121_vm2, %v1771_v14 }
   0x9   :  { %562 = vst [vmem:[#allocation4] sm:$0xff] %v1771_v14 }
   0xa   :  { %563 = vst [vmem:[#allocation4 + $0x8] sm:$0xff] %v1771_v14 }
   0xb   :  { %564 = vst [vmem:[#allocation4 + $0x10] sm:$0xff] %v1771_v14 }
   0xc   :  { %565 = vst [vmem:[#allocation4 + $0x18] sm:$0xff] %v1771_v14 }
  0x16   :  { %1311 = vmatmul.msk.bf16.gmra.mxu0 %vm51_vm1, %v43_v7 }
  0x26   :  { %1312 = vmatmul.msk.bf16.gmra.mxu0 %vm51_vm1, %v44_v10 }
  0x36   :  { %1313 = vmatmul.msk.bf16.gmra.mxu0 %vm51_vm1, %v45_v13  ;;  %vm209_vm1 = vsmask.f32 7440 }
  0x83   :  { %v77_v16 = vpop.f32.mrf.mxu0 }
  0x84   :  { %v78_v17 = vadd.f32 %v1862_v15, %v77_v16 }
  0x86   :  { %vm97_vm3 = vcmp.gt.f32.partialorder %v78_v17, 0.0  ;;  %v105_v18 = vmul.f32 0.2, %v78_v17 }
  0x88   :  { %v113_v19 = vsel %vm97_vm3, %v78_v17, %v105_v18  ;;  %vm240_vm3 = vcmask 518144  }
  0x89   :  { %130 = vst.msk [vmem:[#allocation2 + $0x1] sm:$0xff] %vm121_vm2, %v113_v19 }
  0x8b   :  { %v79_v20 = vpop.f32.mrf.mxu0 }
  0x8c   :  { %v80_v21 = vadd.f32 %v1862_v15, %v79_v20 }
  0x8e   :  { %vm98_vm4 = vcmp.gt.f32.partialorder %v80_v21, 0.0  ;;  %v106_v22 = vmul.f32 0.2, %v80_v21 }
  0x90   :  { %v114_v23 = vsel %vm98_vm4, %v80_v21, %v106_v22  ;;  %vm168_vm4 = vcmask 1043968  }
  0x91   :  { %131 = vst.msk [vmem:[#allocation2 + $0x9] sm:$0xff] %vm121_vm2, %v114_v23 }
  0x93   :  { %v82_v24 = vpop.f32.mrf.mxu0 }
  0x94   :  { %v83_v25 = vadd.f32 %v1862_v15, %v82_v24 }
  0x96   :  { %vm99_vm5 = vcmp.gt.f32.partialorder %v83_v25, 0.0  ;;  %v107_v26 = vmul.f32 0.2, %v83_v25 }
  0x98   :  { %v115_v27 = vsel %vm99_vm5, %v83_v25, %v107_v26  ;;  %v155_v28 = vld [vmem:[#allocation2 + $0x1] ss:$2 sm:$0xff]  ;;  %v142_v29 = vld [vmem:[#allocation2] ss:$2 sm:$0xff]  ;;  %vm1953_vm5 = vmand %vm168_vm4, %vm149_vm10 }
  0x99   :  { %v176_v30 = vld [vmem:[#allocation2 + $0x2] ss:$2 sm:$0xff]  ;;  %132 = vst.msk [vmem:[#allocation2 + $0x11] sm:$0xff] %vm121_vm2, %v115_v27  ;;  %v158_v31 = vpack.c.bf16 %v155_v28, %v155_v28  ;;  %v145_v32 = vpack.c.bf16 %v142_v29, %v142_v29 }
  0x9a   :  { %v179_v33 = vpack.c.bf16 %v176_v30, %v176_v30 }
  0x9b   :  { %v84_v34 = vpop.f32.mrf.mxu0  ;;  %162 = vrot.lane.b32.xlu2 %v158_v31, %s1772_s2  ;;  %147 = vst.msk [vmem:[#allocation3] sm:$0xf] %vm140_vm6, %v145_v32 }
  0x9c   :  { %v85_v35 = vadd.f32 %v1862_v15, %v84_v34  ;;  %181 = vst.msk [vmem:[#allocation3 + $0x4] sm:$0xf] %vm140_vm6, %v179_v33 }
  0x9e   :  { %vm100_vm7 = vcmp.gt.f32.partialorder %v85_v35, 0.0  ;;  %v108_v36 = vmul.f32 0.2, %v85_v35 }
  0xa0   :  { %v116_v37 = vsel %vm100_vm7, %v85_v35, %v108_v36  ;;  %v186_v29 = vld [vmem:[#allocation2 + $0x3] ss:$2 sm:$0xff]  ;;  %vm234_vm7 = vsmask.f32 7950 }
  0xa1   :  { %134 = vst.msk [vmem:[#allocation2 + $0x19] sm:$0x3f] %vm133_vm8, %v116_v37  ;;  %v189_v34 = vpack.c.bf16 %v186_v29, %v186_v29  ;;  %v1679_v29 = vld [vmem:[%s2431_s3 + $0x48] sm:$0xff] }
  0xa2   :  { %136 = vst.msk [vmem:[#allocation2 + $0x1b] sm:$0xc0] %vm135_vm9, %v116_v37  ;;  %vm282_vm9 = vcmask 1042944  }
  0xa3   :  { %v87_v38 = vpop.f32.mrf.mxu0 }
  0xa4   :  { %v88_v39 = vadd.f32 %v1862_v15, %v87_v38 }
  0xa6   :  { %vm101_vm11 = vcmp.gt.f32.partialorder %v88_v39, 0.0  ;;  %v109_v40 = vmul.f32 0.2, %v88_v39 }
  0xa8   :  { %v117_v41 = vsel %vm101_vm11, %v88_v39, %v109_v40  ;;  %v188_v42 = vld [vmem:[#allocation2 + $0x13] ss:$2 sm:$0x7f]  ;;  %v178_v45 = vld [vmem:[#allocation2 + $0x12] ss:$2 sm:$0x7f] }
  0xa9   :  { %137 = vst.msk [vmem:[#allocation2 + $0x23] sm:$0xff] %vm121_vm2, %v117_v41  ;;  %v190_v43 = vpack.c.bf16 %v188_v42, %v188_v42  ;;  %v180_v46 = vpack.c.bf16 %v178_v45, %v178_v45  ;;  %v144_v48 = vld [vmem:[#allocation2 + $0x10] ss:$2 sm:$0x7f]  ;;  %vm276_vm11 = vcmask 1043971  }
  0xaa   :  { %v146_v50 = vpack.c.bf16 %v144_v48, %v144_v48  ;;  %v157_v53 = vld [vmem:[#allocation2 + $0x11] ss:$2 sm:$0x7f] }
  0xab   :  { %v89_v49 = vpop.f32.mrf.mxu0  ;;  %195 = vrot.lane.b32.xlu0 %v190_v43, %s1772_s2  ;;  %v183_v52 = vsel %vm150_vm12, %v180_v46, %v182_v44  ;;  %v159_v57 = vpack.c.bf16 %v157_v53, %v157_v53 }
  0xac   :  { %v90_v51 = vadd.f32 %v1862_v15, %v89_v49  ;;  %184 = vst [vmem:[#allocation3 + $0xc] sm:$0xf] %v183_v52  ;;  %v152_v54 = vsel %vm150_vm12, %v146_v50, %v151_v47  ;;  %vm277_vm12 = vmand %vm276_vm11, %vm234_vm7  ;;  %vm1273_vm11 = vcmask 1040384  }
  0xad   :  { %153 = vst [vmem:[#allocation3 + $0x8] sm:$0xf] %v152_v54 }
  0xae   :  { %vm102_vm13 = vcmp.gt.f32.partialorder %v90_v51, 0.0  ;;  %v110_v55 = vmul.f32 0.2, %v90_v51 }
  0xb0   :  { %v118_v56 = vsel %vm102_vm13, %v90_v51, %v110_v55 }
  0xb1   :  { %138 = vst.msk [vmem:[#allocation2 + $0x2b] sm:$0xff] %vm121_vm2, %v118_v56 }
  0xb3   :  { %v92_v58 = vpop.f32.mrf.mxu0  ;;  %164 = vrot.lane.b32.xlu0 %v159_v57, %s1772_s2 }
  0xb4   :  { %v93_v59 = vadd.f32 %v1862_v15, %v92_v58 }
  0xb6   :  { %vm103_vm14 = vcmp.gt.f32.partialorder %v93_v59, 0.0  ;;  %v111_v60 = vmul.f32 0.2, %v93_v59 }
  0xb8   :  { %v119_v61 = vsel %vm103_vm14, %v93_v59, %v111_v60  ;;  %v243_v62 = vld [vmem:[#allocation2 + $0x21] ss:$2 sm:$0xff]  ;;  %v285_v2 = vld [vmem:[#allocation2 + $0x22] ss:$2 sm:$0xff] }
  0xb9   :  { %v318_v63 = vld [vmem:[#allocation2 + $0x23] ss:$2 sm:$0xff]  ;;  %139 = vst.msk [vmem:[#allocation2 + $0x33] sm:$0xff] %vm121_vm2, %v119_v61  ;;  %v246_v0 = vpack.c.bf16 %v243_v62, %v243_v62  ;;  %v204_v3 = vld [vmem:[#allocation2 + $0x20] ss:$2 sm:$0xff]  ;;  %v288_v4 = vpack.c.bf16 %v285_v2, %v285_v2  ;;  %vm1896_vm2 = vmor %vm149_vm10, %vm209_vm1 }
  0xba   :  { %v321_v1 = vpack.c.bf16 %v318_v63, %v318_v63  ;;  %v207_v5 = vpack.c.bf16 %v204_v3, %v204_v3  ;;  %vm2241_vm1 = vmand %vm64_vm0, %vm149_vm10  ;;  %vm610_vm10 = vcmask 1043459  }
  0xbb   :  { %v94_v6 = vpop.f32.mrf.mxu0  ;;  %v249_v7 = vshll.u32 %v246_v0, 16  ;;  %v252_v8 = vshrl.u32 %v246_v0, 16  ;;  %v291_v14 = vshll.u32 %v288_v4, 16  ;;  %v294_v17 = vshrl.u32 %v288_v4, 16 }
  0xbc   :  { %v324_v9 = vshll.u32 %v321_v1, 16  ;;  %v327_v10 = vshrl.u32 %v321_v1, 16  ;;  %v95_v11 = vadd.f32 %v1862_v15, %v94_v6  ;;  %v212_v18 = vshll.u32 %v207_v5, 16 }
  0xbd   :  { %v251_v12 = vrot.slane %v249_v7, 5  ;;  %v254_v19 = vrot.slane %v252_v8, 4  ;;  %v215_v23 = vshrl.u32 %v207_v5, 16  ;;  %v1887_v24 = vrot.slane %v291_v14, 5  ;;  %v1684_v14 = vld [vmem:[%s2431_s3 + $0x70] sm:$0xff] }
  0xbe   :  { %v326_v13 = vrot.slane %v324_v9, 5  ;;  %vm104_vm15 = vcmp.gt.f32.partialorder %v95_v11, 0.0  ;;  %v112_v16 = vmul.f32 0.2, %v95_v11  ;;  %v329_v20 = vrot.slane %v327_v10, 4 }
  0xbf   :  { %v296_v25 = vrot.slane %v294_v17, 4  ;;  %v1889_v15 = vrot.slane %v212_v18, 5  ;;  %v217_v26 = vrot.slane %v215_v23, 4  ;;  %v255_v28 = vor.u32 %v254_v19, %v251_v12  ;;  %v1683_v17 = vld [vmem:[%s2431_s3 + $0x68] sm:$0xff]  ;;  %v1674_v18 = vld [vmem:[%s2431_s3 + $0x20] sm:$0xff]  ;;  %v1680_v23 = vld [vmem:[%s2431_s3 + $0x50] sm:$0xff] }
  0xc0   :  { %v1756_v21 = vpack.i.bf16 %v251_v12, %v326_v13  ;;  %v120_v22 = vsel %vm104_vm15, %v95_v11, %v112_v16  ;;  %v330_v27 = vor.u32 %v329_v20, %v326_v13  ;;  %v1677_v11 = vld [vmem:[%s2431_s3 + $0x38] sm:$0xff]  ;;  %v1676_v13 = vld [vmem:[%s2431_s3 + $0x30] sm:$0xff]  ;;  %v1675_v16 = vld [vmem:[%s2431_s3 + $0x28] sm:$0xff] }
  0xc1   :  { %141 = vst.msk [vmem:[#allocation2 + $0x3b] sm:$0xf] %vm140_vm6, %v120_v22  ;;  %v297_v30 = vor.u32 %v296_v25, %v1887_v24  ;;  %v218_v31 = vor.u32 %v217_v26, %v1889_v15  ;;  %v256_v33 = vrot.slane %v255_v28, 4  ;;  %512 = vmatpush.bf16.msra.mxu1 %v1677_v11  ;;  %v1685_v12 = vld [vmem:[%s2431_s3 + $0x78] sm:$0xff]  ;;  %v1682_v19 = vld [vmem:[%s2431_s3 + $0x60] sm:$0xff]  ;;  %v1672_v22 = vld [vmem:[%s2431_s3 + $0x10] sm:$0xff] }
  0xc2   :  { %1757 = vrot.lane.b32.xlu1 %v1756_v21, %s1772_s2  ;;  %v331_v32 = vrot.slane %v330_v27, 4  ;;  %531 = vmatpush.bf16.msra.mxu2 %v1685_v12  ;;  %v1673_v20 = vld [vmem:[%s2431_s3 + $0x18] sm:$0xff]  ;;  %v1671_v26 = vld [vmem:[%s2431_s3 + $0x8] sm:$0xff]  ;;  %v1596_v12 = vld [vmem:[%s2432_s5 + $0x170] sm:$0xf] }
  0xc3   :  { %v298_v42 = vrot.slane %v297_v30, 4  ;;  %v219_v44 = vrot.slane %v218_v31, 4  ;;  %v1681_v21 = vld [vmem:[%s2431_s3 + $0x58] sm:$0xff]  ;;  %v200_v28 = vld [vmem:[#allocation3 + $0xc] sm:$0xf]  ;;  %v1670_v31 = vld [vmem:[%s2431_s3] sm:$0xff] }
  0xc4   :  { %v1721_v11 = vld [vmem:[%s2432_s5 + $0xf4] sm:$0xf0]  ;;  %v1735_v25 = vld [vmem:[%s2432_s5 + $0x164] sm:$0xf0] }
  0xc5   :  { %513 = vmatpush.bf16.msra.mxu1 %v1676_v13 }
  0xc6   :  { %532 = vmatpush.bf16.msra.mxu2 %v1684_v14  ;;  %v1737_v14 = vld [vmem:[%s2432_s5 + $0x174] sm:$0xf0] }
  0xc8   :  { %v320_v35 = vld [vmem:[#allocation2 + $0x33] ss:$2 sm:$0x7f]  ;;  %v287_v39 = vld [vmem:[#allocation2 + $0x32] ss:$2 sm:$0x7f] }
  0xc9   :  { %v245_v36 = vld [vmem:[#allocation2 + $0x31] ss:$2 sm:$0x7f]  ;;  %v322_v37 = vpack.c.bf16 %v320_v35, %v320_v35  ;;  %v206_v40 = vld [vmem:[#allocation2 + $0x30] ss:$2 sm:$0x7f]  ;;  %v289_v41 = vpack.c.bf16 %v287_v39, %v287_v39  ;;  %514 = vmatpush.bf16.msra.mxu1 %v1675_v16  ;;  %v1597_v16 = vor.u32 %v1737_v14, %v1596_v12 }
  0xca   :  { %193 = vrot.lane.b32.xlu1 %v189_v34, %s1772_s2  ;;  %v247_v38 = vpack.c.bf16 %v245_v36, %v245_v36  ;;  %v208_v43 = vpack.c.bf16 %v206_v40, %v206_v40  ;;  %533 = vmatpush.bf16.msra.mxu2 %v1683_v17  ;;  %v172_v34 = vld [vmem:[#allocation3 + $0x8] sm:$0xf]  ;;  %v1436_v17 = vld [vmem:[%s2432_s5 + $0x30] sm:$0xf]  ;;  %v1700_v14 = vld [vmem:[%s2432_s5 + $0x54] sm:$0xf] }
  0xcb   :  { %v333_v45 = vshll.u32 %v322_v37, 16  ;;  %v337_v47 = vshrl.u32 %v322_v37, 16  ;;  %v300_v50 = vshll.u32 %v289_v41, 16  ;;  %v304_v53 = vshrl.u32 %v289_v41, 16 }
  0xcc   :  { %v258_v46 = vshll.u32 %v247_v38, 16  ;;  %v262_v48 = vshrl.u32 %v247_v38, 16  ;;  %v221_v51 = vshll.u32 %v208_v43, 16  ;;  %v225_v52 = vshrl.u32 %v208_v43, 16 }
  0xcd   :  { %v335_v54 = vrot.slane %v333_v45, 5  ;;  %v339_v56 = vrot.slane %v337_v47, 4  ;;  %v302_v58 = vrot.slane %v300_v50, 5  ;;  %v306_v61 = vrot.slane %v304_v53, 4  ;;  %515 = vmatpush.bf16.msra.mxu1 %v1674_v18  ;;  %v1697_v18 = vld [vmem:[%s2432_s5 + $0x34] sm:$0xf0] }
  0xce   :  { %v260_v55 = vrot.slane %v258_v46, 5  ;;  %v264_v57 = vrot.slane %v262_v48, 4  ;;  %v223_v59 = vrot.slane %v221_v51, 5  ;;  %v227_v60 = vrot.slane %v225_v52, 4  ;;  %534 = vmatpush.bf16.msra.mxu2 %v1682_v19 }
  0xcf   :  { %v336_v62 = vsel %vm1896_vm2, %v331_v32, %v335_v54  ;;  %v340_v0 = vor.u32 %v339_v56, %v335_v54  ;;  %v303_v1 = vsel %vm1896_vm2, %v298_v42, %v302_v58  ;;  %v307_v4 = vor.u32 %v306_v61, %v302_v58  ;;  %v1678_v32 = vld [vmem:[%s2431_s3 + $0x40] sm:$0xff] }
  0xd0   :  { %v261_v63 = vsel %vm1896_vm2, %v256_v33, %v260_v55  ;;  %344 = vrot.lane.b32.xlu2 %v336_v62, %s1772_s2  ;;  %v228_v2 = vor.u32 %v227_v60, %v223_v59  ;;  %v224_v3 = vsel %vm1896_vm2, %v219_v44, %v223_v59  ;;  %315 = vst.msk [vmem:[#allocation3 + $0x14] sm:$0xf] %vm140_vm6, %v303_v1  ;;  %v1468_v62 = vld [vmem:[%s2432_s5 + $0x70] sm:$0xf]  ;;  %v1460_v1 = vld [vmem:[%s2432_s5 + $0x60] sm:$0xf]  ;;  %vm2343_vm2 = vmand %vm610_vm10, %vm234_vm7 }
  0xd1   :  { %v341_v5 = vrot.slane %v340_v0, 4  ;;  %v265_v6 = vor.u32 %v264_v57, %v260_v55  ;;  %239 = vst.msk [vmem:[#allocation3 + $0x10] sm:$0xf] %vm140_vm6, %v224_v3  ;;  %v308_v8 = vrot.slane %v307_v4, 4  ;;  %516 = vmatpush.bf16.msra.mxu1 %v1673_v20  ;;  %vm233_vm6 = vcmask 519171  }
  0xd2   :  { %269 = vrot.lane.b32.xlu1 %v261_v63, %s1772_s2  ;;  %v229_v7 = vrot.slane %v228_v2, 4  ;;  %535 = vmatpush.bf16.msra.mxu2 %v1681_v21  ;;  %vm235_vm8 = vmand %vm233_vm6, %vm234_vm7  ;;  %v1705_v63 = vld [vmem:[%s2432_s5 + $0x74] sm:$0xf0]  ;;  %v1703_v2 = vld [vmem:[%s2432_s5 + $0x64] sm:$0xf0]  ;;  %v1437_v19 = vor.u32 %v1697_v18, %v1436_v17  ;;  %vm1213_vm6 = vcmask 1046528  }
  0xd3   :  { %346 = vrot.lane.b32.xlu0 %v341_v5, %s1772_s2  ;;  %316 = vst.msk [vmem:[#allocation3 + $0x1c] sm:$0x7] %vm240_vm3, %v308_v8  ;;  %v266_v9 = vrot.slane %v265_v6, 4  ;;  %v1469_v0 = vor.u32 %v1705_v63, %v1468_v62  ;;  %v1461_v3 = vor.u32 %v1703_v2, %v1460_v1  ;;  %v1452_v4 = vld [vmem:[%s2432_s5 + $0x50] sm:$0xf] }
  0xd4   :  { %241 = vst.msk [vmem:[#allocation3 + $0x18] sm:$0x7] %vm240_vm3, %v229_v7  ;;  %v1701_v5 = vld [vmem:[%s2432_s5 + $0x54] sm:$0xf0]  ;;  %v1444_v7 = vld [vmem:[%s2432_s5 + $0x40] sm:$0xf] }
  0xd5   :  { %517 = vmatpush.bf16.msra.mxu1 %v1672_v22  ;;  %1084 = vmatpush.bf16.msra.mxu3 %v1469_v0  ;;  %v1453_v6 = vor.u32 %v1701_v5, %v1452_v4  ;;  %v1699_v8 = vld [vmem:[%s2432_s5 + $0x44] sm:$0xf0]  ;;  %v1524_v20 = vld [vmem:[%s2432_s5 + $0xe0] sm:$0xf]  ;;  %v1702_v0 = vld [vmem:[%s2432_s5 + $0x64] sm:$0xf] }
  0xd6   :  { %536 = vmatpush.bf16.msra.mxu2 %v1680_v23  ;;  %v1719_v21 = vld [vmem:[%s2432_s5 + $0xe4] sm:$0xf0]  ;;  %v1588_v22 = vld [vmem:[%s2432_s5 + $0x160] sm:$0xf]  ;;  %v1462_v1 = vld [vmem:[%s2432_s5 + $0x68] sm:$0xf0] }
  0xd7   :  { %v1525_v23 = vor.u32 %v1719_v21, %v1524_v20  ;;  %v1492_v4 = vld [vmem:[%s2432_s5 + $0xa0] sm:$0xf]  ;;  %v1711_v5 = vld [vmem:[%s2432_s5 + $0xa4] sm:$0xf0]  ;;  %v1484_v20 = vld [vmem:[%s2432_s5 + $0x90] sm:$0xf] }
  0xd8   :  { %271 = vrot.lane.b32.xlu2 %v266_v9, %s1772_s2  ;;  %v1445_v9 = vor.u32 %v1699_v8, %v1444_v7  ;;  %v1493_v8 = vor.u32 %v1711_v5, %v1492_v4  ;;  %v1709_v21 = vld [vmem:[%s2432_s5 + $0x94] sm:$0xf0]  ;;  %v1620_v4 = vld [vmem:[%s2432_s5 + $0x1a0] sm:$0xf] }
  0xd9   :  { %518 = vmatpush.bf16.msra.mxu1 %v1671_v26  ;;  %1085 = vmatpush.bf16.msra.mxu3 %v1461_v3  ;;  %v1589_v26 = vor.u32 %v1735_v25, %v1588_v22  ;;  %v1465_v3 = vor.u32 %v1702_v0, %v1462_v1  ;;  %v1548_v22 = vld [vmem:[%s2432_s5 + $0x110] sm:$0xf]  ;;  %v1485_v25 = vor.u32 %v1709_v21, %v1484_v20 }
  0xda   :  { %537 = vmatpush.bf16.msra.mxu2 %v1679_v29  ;;  %v1695_v29 = vld [vmem:[%s2432_s5 + $0x24] sm:$0xf0] }
  0xdd   :  { %519 = vmatpush.bf16.msra.mxu1 %v1670_v31  ;;  %1086 = vmatpush.bf16.msra.mxu3 %v1453_v6  ;;  %v1556_v6 = vld [vmem:[%s2432_s5 + $0x120] sm:$0xf] }
  0xde   :  { %538 = vmatpush.bf16.msra.mxu2 %v1678_v32  ;;  %v1717_v32 = vld [vmem:[%s2432_s5 + $0xd4] sm:$0xf0] }
  0xe1   :  { %1087 = vmatpush.bf16.msra.mxu3 %v1445_v9  ;;  %v1727_v9 = vld [vmem:[%s2432_s5 + $0x124] sm:$0xf0] }
  0xe2   :  { %1112 = vmatpush.bf16.msrb.mxu2 %v1597_v16  ;;  %v1557_v12 = vor.u32 %v1727_v9, %v1556_v6  ;;  %v1454_v16 = vld [vmem:[%s2432_s5 + $0x58] sm:$0xf0] }
  0xe3   :  { %v1457_v18 = vor.u32 %v1700_v14, %v1454_v16  ;;  %v581_v14 = vld [vmem:[#allocation5 + $0x4] sm:$0xf] }
  0xe5   :  { %1088 = vmatpush.bf16.msra.mxu3 %v1437_v19 }
  0xe6   :  { %1113 = vmatpush.bf16.msrb.mxu2 %v1589_v26  ;;  %v1725_v26 = vld [vmem:[%s2432_s5 + $0x114] sm:$0xf0] }
  0xf5   :  { %v163_v10 = vpop.permute.xlu2 %162 }
  0xf6   :  { %169 = vst.msk [vmem:[#allocation3] sm:$0xf] %vm168_vm4, %v163_v10  ;;  %v1532_v10 = vld [vmem:[%s2432_s5 + $0xf0] sm:$0xf] }
  0xf7   :  { %v1533_v13 = vor.u32 %v1721_v11, %v1532_v10  ;;  %v1652_v10 = vld [vmem:[%s2432_s5 + $0x1e0] sm:$0xf]  ;;  %v1751_v11 = vld [vmem:[%s2432_s5 + $0x1e4] sm:$0xf0] }
  0xf9   :  { %1098 = vmatpush.bf16.msrb.mxu1 %v1533_v13  ;;  %v1653_v13 = vor.u32 %v1751_v11, %v1652_v10  ;;  %v1692_v11 = vld [vmem:[%s2432_s5 + $0x14] sm:$0xf] }
  0xfd   :  { %1099 = vmatpush.bf16.msrb.mxu1 %v1525_v23 }
 0x11d   :  { %v196_v27 = vpop.permute.xlu0 %195 }
 0x11e   :  { %v201_v30 = vsel %vm1953_vm5, %v196_v27, %v200_v28  ;;  %v1428_v28 = vld [vmem:[%s2432_s5 + $0x20] sm:$0xf] }
 0x11f   :  { %202 = vst [vmem:[#allocation3 + $0xc] sm:$0xf] %v201_v30  ;;  %v1516_v30 = vld [vmem:[%s2432_s5 + $0xd0] sm:$0xf]  ;;  %v1429_v31 = vor.u32 %v1695_v29, %v1428_v28  ;;  %v1749_v28 = vld [vmem:[%s2432_s5 + $0x1d4] sm:$0xf0] }
 0x121   :  { %1089 = vmatpush.bf16.msra.mxu3 %v1429_v31 }
 0x125   :  { %v165_v33 = vpop.permute.xlu0 %164 }
 0x126   :  { %v173_v35 = vsel %vm1953_vm5, %v165_v33, %v172_v34  ;;  %v312_v36 = vld [vmem:[#allocation3 + $0xc] sm:$0x8]  ;;  %v1580_v33 = vld [vmem:[%s2432_s5 + $0x150] sm:$0xf]  ;;  %v1733_v34 = vld [vmem:[%s2432_s5 + $0x154] sm:$0xf0] }
 0x127   :  { %174 = vst [vmem:[#allocation3 + $0x8] sm:$0xf] %v173_v35  ;;  %v313_v37 = vsel %vm235_vm8, %v1887_v24, %v312_v36  ;;  %v1517_v35 = vor.u32 %v1717_v32, %v1516_v30  ;;  %v1581_v36 = vor.u32 %v1733_v34, %v1580_v33  ;;  %v1549_v30 = vor.u32 %v1725_v26, %v1548_v22  ;;  %v1698_v32 = vld [vmem:[%s2432_s5 + $0x44] sm:$0xf]  ;;  %v1446_v33 = vld [vmem:[%s2432_s5 + $0x48] sm:$0xf0] }
 0x128   :  { %314 = vst [vmem:[#allocation3 + $0xc] sm:$0x8] %v313_v37  ;;  %v2057_v37 = vld [vmem:[%s2430_s4] ss:$0 sm:$0xff]  ;;  %vm1259_vm5 = vcmask 1047559  }
 0x129   :  { %1100 = vmatpush.bf16.msrb.mxu1 %v1517_v35  ;;  %1114 = vmatpush.bf16.msrb.mxu2 %v1581_v36  ;;  %v1476_v34 = vld [vmem:[%s2432_s5 + $0x80] sm:$0xf]  ;;  %v1449_v36 = vor.u32 %v1698_v32, %v1446_v33  ;;  %v1582_v32 = vld [vmem:[%s2432_s5 + $0x158] sm:$0xf0]  ;;  %v1741_v33 = vld [vmem:[%s2432_s5 + $0x194] sm:$0xf0] }
 0x12a   :  { %v345_v38 = vpop.permute.xlu2 %344 }
 0x12b   :  { %354 = vst.msk [vmem:[#allocation3 + $0x14] sm:$0xf] %vm168_vm4, %v345_v38  ;;  %v1420_v38 = vld [vmem:[%s2432_s5 + $0x10] sm:$0xf] }
 0x12e   :  { %v236_v39 = vld [vmem:[#allocation3 + $0x8] sm:$0x8] }
 0x12f   :  { %v237_v40 = vsel %vm235_vm8, %v1889_v15, %v236_v39  ;;  %v351_v44 = vld [vmem:[#allocation3 + $0xc] sm:$0x8]  ;;  %v1316_v15 = vld [vmem:[#allocation3] sm:$0xf]  ;;  %v1693_v39 = vld [vmem:[%s2432_s5 + $0x14] sm:$0xf0] }
 0x130   :  { %238 = vst [vmem:[#allocation3 + $0x8] sm:$0x8] %v237_v40  ;;  %v1421_v40 = vor.u32 %v1693_v39, %v1420_v38  ;;  %v1707_v38 = vld [vmem:[%s2432_s5 + $0x84] sm:$0xf0] }
 0x131   :  { %v1477_v39 = vor.u32 %v1707_v38, %v1476_v34 }
 0x132   :  { %v272_v41 = vpop.permute.xlu2 %271  ;;  %v1668_v60 = vld [vmem:[#allocation3 + $0x14] sm:$0xf]  ;;  %1090 = vmatpush.bf16.msra.mxu3 %v1421_v40  ;;  %v1540_v40 = vld [vmem:[%s2432_s5 + $0x100] sm:$0xf] }
 0x133   :  { %283 = vst.msk [vmem:[#allocation3 + $0x18] sm:$0x7] %vm282_vm9, %v272_v41  ;;  %v1508_v41 = vld [vmem:[%s2432_s5 + $0xc0] sm:$0xf] }
 0x134   :  { %v1758_v42 = vpop.permute.xlu1 %1757 }
 0x135   :  { %v1759_v43 = vunpack.i.l.bf16 %v1758_v42  ;;  %v1760_v45 = vunpack.i.h.bf16 %v1758_v42  ;;  %v1715_v42 = vld [vmem:[%s2432_s5 + $0xc4] sm:$0xf0] }
 0x137   :  { %v352_v24 = vsel %vm277_vm12, %v1759_v43, %v351_v44  ;;  %v278_v46 = vld [vmem:[#allocation3 + $0x8] sm:$0x8]  ;;  %v1572_v43 = vld [vmem:[%s2432_s5 + $0x140] sm:$0xf]  ;;  %v1509_v44 = vor.u32 %v1715_v42, %v1508_v41 }
 0x138   :  { %353 = vst [vmem:[#allocation3 + $0xc] sm:$0x8] %v352_v24  ;;  %v279_v47 = vsel %vm277_vm12, %v1760_v45, %v278_v46  ;;  %v1731_v45 = vld [vmem:[%s2432_s5 + $0x144] sm:$0xf0]  ;;  %v1704_v24 = vld [vmem:[%s2432_s5 + $0x74] sm:$0xf] }
 0x139   :  { %280 = vst [vmem:[#allocation3 + $0x8] sm:$0x8] %v279_v47  ;;  %v1470_v46 = vld [vmem:[%s2432_s5 + $0x78] sm:$0xf0]  ;;  %v1573_v47 = vor.u32 %v1731_v45, %v1572_v43  ;;  %1101 = vmatpush.bf16.msrb.mxu1 %v1509_v44  ;;  %v1723_v41 = vld [vmem:[%s2432_s5 + $0x104] sm:$0xf0] }
 0x13a   :  { %v1669_v57 = vld [vmem:[#allocation3 + $0x14] sm:$0x70]  ;;  %v1636_v42 = vld [vmem:[%s2432_s5 + $0x1c0] sm:$0xf]  ;;  %v1541_v44 = vor.u32 %v1723_v41, %v1540_v40  ;;  %v1747_v45 = vld [vmem:[%s2432_s5 + $0x1c4] sm:$0xf0] }
 0x13b   :  { %1115 = vmatpush.bf16.msrb.mxu2 %v1573_v47  ;;  %v1637_v47 = vor.u32 %v1747_v45, %v1636_v42  ;;  %v1414_v40 = vld [vmem:[%s2432_s5 + $0x8] sm:$0xf0]  ;;  %v1714_v41 = vld [vmem:[%s2432_s5 + $0xc4] sm:$0xf] }
 0x13c   :  { %v194_v48 = vpop.permute.xlu1 %193  ;;  %v1730_v45 = vld [vmem:[%s2432_s5 + $0x144] sm:$0xf] }
 0x13d   :  { %199 = vst.msk [vmem:[#allocation3 + $0x4] sm:$0xf] %vm168_vm4, %v194_v48  ;;  %v1473_v48 = vor.u32 %v1704_v24, %v1470_v46  ;;  %v1696_v24 = vld [vmem:[%s2432_s5 + $0x34] sm:$0xf]  ;;  %v1438_v46 = vld [vmem:[%s2432_s5 + $0x38] sm:$0xf0] }
 0x13f   :  { %v1318_v53 = vld [vmem:[#allocation3 + $0x8] sm:$0xf0]  ;;  %1140 = vmatpush.bf16.msrb.mxu0 %v1473_v48  ;;  %v1441_v48 = vor.u32 %v1696_v24, %v1438_v46 }
 0x140   :  { %v1667_v49 = vld [vmem:[#allocation3 + $0x4] sm:$0xf0]  ;;  %v1574_v24 = vld [vmem:[%s2432_s5 + $0x148] sm:$0xf0] }
 0x141   :  { %v1317_v50 = vor.u32 %v1667_v49, %v1316_v15  ;;  %v1412_v49 = vld [vmem:[%s2432_s5] sm:$0xf] }
 0x143   :  { %520 = vmatmul.bf16.vlgmr.msra.gmra.mxu1 %v1317_v50  ;;  %v1691_v50 = vld [vmem:[%s2432_s5 + $0x4] sm:$0xf0]  ;;  %1141 = vmatpush.bf16.msrb.mxu0 %v1465_v3  ;;  %v1590_v3 = vld [vmem:[%s2432_s5 + $0x168] sm:$0xf0] }
 0x144   :  { %v270_v51 = vpop.permute.xlu1 %269  ;;  %v1666_v52 = vld [vmem:[#allocation3 + $0x4] sm:$0xf] }
 0x145   :  { %281 = vst.msk [vmem:[#allocation3 + $0x10] sm:$0xf] %vm168_vm4, %v270_v51  ;;  %v1321_v54 = vor.u32 %v1666_v52, %v1318_v53  ;;  %v347_v55 = vpop.permute.xlu0 %346  ;;  %v1413_v53 = vor.u32 %v1691_v50, %v1412_v49  ;;  %v1534_v49 = vld [vmem:[%s2432_s5 + $0xf8] sm:$0xf0] }
 0x146   :  { %355 = vst.msk [vmem:[#allocation3 + $0x1c] sm:$0x7] %vm282_vm9, %v347_v55  ;;  %v1713_v55 = vld [vmem:[%s2432_s5 + $0xb4] sm:$0xf0]  ;;  %vm1265_vm9 = vcmask 1045504  }
 0x147   :  { %539 = vmatmul.bf16.vlgmr.msra.gmra.mxu2 %v1321_v54  ;;  %v1500_v54 = vld [vmem:[%s2432_s5 + $0xb0] sm:$0xf]  ;;  %1091 = vmatpush.bf16.msra.mxu3 %v1413_v53  ;;  %v1598_v53 = vld [vmem:[%s2432_s5 + $0x178] sm:$0xf0] }
 0x148   :  { %1142 = vmatpush.bf16.msrb.mxu0 %v1457_v18 }
 0x14c   :  { %v1324_v56 = vld [vmem:[#allocation3 + $0x10] sm:$0xf]  ;;  %1143 = vmatpush.bf16.msrb.mxu0 %v1449_v36 }
 0x14d   :  { %v1325_v58 = vor.u32 %v1669_v57, %v1324_v56  ;;  %v1326_v59 = vld [vmem:[#allocation3 + $0x18] sm:$0x70]  ;;  %v1564_v56 = vld [vmem:[%s2432_s5 + $0x130] sm:$0xf] }
 0x14e   :  { %v1329_v61 = vor.u32 %v1668_v60, %v1326_v59  ;;  %v1729_v59 = vld [vmem:[%s2432_s5 + $0x134] sm:$0xf0]  ;;  %v1660_v60 = vld [vmem:[%s2432_s5 + $0x1f0] sm:$0xf] }
 0x14f   :  { %v1565_v62 = vor.u32 %v1729_v59, %v1564_v56  ;;  %v1628_v56 = vld [vmem:[%s2432_s5 + $0x1b0] sm:$0xf] }
 0x150   :  { %1144 = vmatpush.bf16.msrb.mxu0 %v1441_v48 }
 0x151   :  { %1116 = vmatpush.bf16.msrb.mxu2 %v1565_v62  ;;  %v1718_v62 = vld [vmem:[%s2432_s5 + $0xe4] sm:$0xf] }
 0x153   :  { %525 = vmatmul.bf16.gmra.mxu1 %v1325_v58  ;;  %v1501_v58 = vor.u32 %v1713_v55, %v1500_v54 }
 0x155   :  { %1102 = vmatpush.bf16.msrb.mxu1 %v1501_v58  ;;  %1117 = vmatpush.bf16.msrb.mxu2 %v1557_v12  ;;  %v1694_v58 = vld [vmem:[%s2432_s5 + $0x24] sm:$0xf]  ;;  %v1422_v12 = vld [vmem:[%s2432_s5 + $0x18] sm:$0xf0] }
 0x156   :  { %v1425_v20 = vor.u32 %v1692_v11, %v1422_v12 }
 0x157   :  { %544 = vmatmul.bf16.gmra.mxu2 %v1329_v61  ;;  %v1753_v61 = vld [vmem:[%s2432_s5 + $0x1f4] sm:$0xf0] }
 0x158   :  { %v1661_v63 = vor.u32 %v1753_v61, %v1660_v60  ;;  %v1430_v61 = vld [vmem:[%s2432_s5 + $0x28] sm:$0xf0] }
 0x159   :  { %1103 = vmatpush.bf16.msrb.mxu1 %v1493_v8  ;;  %1118 = vmatpush.bf16.msrb.mxu2 %v1549_v30  ;;  %v1433_v0 = vor.u32 %v1694_v58, %v1430_v61  ;;  %v575_v8 = vld [vmem:[#allocation5] sm:$0xf]  ;;  %v1494_v61 = vld [vmem:[%s2432_s5 + $0xa8] sm:$0xf0] }
 0x15a   :  { %1126 = vmatpush.bf16.msrb.mxu3 %v1661_v63  ;;  %v1526_v63 = vld [vmem:[%s2432_s5 + $0xe8] sm:$0xf0] }
 0x15b   :  { %v1529_v1 = vor.u32 %v1718_v62, %v1526_v63  ;;  %1145 = vmatpush.bf16.msrb.mxu0 %v1433_v0  ;;  %v1726_v62 = vld [vmem:[%s2432_s5 + $0x124] sm:$0xf]  ;;  %v1558_v63 = vld [vmem:[%s2432_s5 + $0x128] sm:$0xf0] }
 0x15d   :  { %1104 = vmatpush.bf16.msrb.mxu1 %v1485_v25  ;;  %1119 = vmatpush.bf16.msrb.mxu2 %v1541_v44  ;;  %v587_v25 = vld [vmem:[#allocation5 + $0x8] sm:$0xf]  ;;  %v1510_v44 = vld [vmem:[%s2432_s5 + $0xc8] sm:$0xf0] }
 0x15e   :  { %1127 = vmatpush.bf16.msrb.mxu3 %v1653_v13  ;;  %v1716_v13 = vld [vmem:[%s2432_s5 + $0xd4] sm:$0xf]  ;;  %v1513_v48 = vor.u32 %v1714_v41, %v1510_v44 }
 0x15f   :  { %1146 = vmatpush.bf16.msrb.mxu0 %v1425_v20  ;;  %v1706_v20 = vld [vmem:[%s2432_s5 + $0x84] sm:$0xf] }
 0x161   :  { %1105 = vmatpush.bf16.msrb.mxu1 %v1477_v39  ;;  %v1690_v39 = vld [vmem:[%s2432_s5 + $0x4] sm:$0xf] }
 0x1c0   :  { %v521_v27 = vpop.f32.mrf.mxu1 }
 0x1c1   :  { %v522_v15 = vadd.f32 %v2057_v37, %v521_v27  ;;  %v1644_v27 = vld [vmem:[%s2432_s5 + $0x1d0] sm:$0xf] }
 0x1c2   :  { %v1645_v31 = vor.u32 %v1749_v28, %v1644_v27  ;;  %v1518_v28 = vld [vmem:[%s2432_s5 + $0xd8] sm:$0xf0] }
 0x1c4   :  { %1128 = vmatpush.bf16.msrb.mxu3 %v1645_v31  ;;  %v1521_v31 = vor.u32 %v1716_v13, %v1518_v28 }
 0x1c8   :  { %v523_v51 = vpop.f32.mrf.mxu1  ;;  %1129 = vmatpush.bf16.msrb.mxu3 %v1637_v47 }
 0x1c9   :  { %v524_v17 = vadd.f32 %v2057_v37, %v523_v51 }
 0x1ca   :  { %v540_v52 = vpop.f32.mrf.mxu2 }
 0x1cb   :  { %v541_v57 = vadd.f32 %v540_v52, %v522_v15  ;;  %v1720_v15 = vld [vmem:[%s2432_s5 + $0xf4] sm:$0xf] }
 0x1cc   :  { %v1537_v51 = vor.u32 %v1720_v15, %v1534_v49  ;;  %v1736_v52 = vld [vmem:[%s2432_s5 + $0x174] sm:$0xf]  ;;  %v1577_v15 = vor.u32 %v1730_v45, %v1574_v24  ;;  %v1604_v49 = vld [vmem:[%s2432_s5 + $0x180] sm:$0xf] }
 0x1cd   :  { %vm550_vm13 = vcmp.gt.f32.partialorder %v541_v57, 0.0  ;;  %v554_v2 = vmul.f32 0.2, %v541_v57  ;;  %v1601_v55 = vor.u32 %v1736_v52, %v1598_v53  ;;  %v1712_v53 = vld [vmem:[%s2432_s5 + $0xb4] sm:$0xf] }
 0x1ce   :  { %1154 = vmatpush.bf16.msra.mxu1 %v1537_v51 }
 0x1cf   :  { %v558_v7 = vsel %vm550_vm13, %v541_v57, %v554_v2  ;;  %v1745_v57 = vld [vmem:[%s2432_s5 + $0x1b4] sm:$0xf0]  ;;  %1168 = vmatpush.bf16.msra.mxu2 %v1601_v55  ;;  %v1734_v2 = vld [vmem:[%s2432_s5 + $0x164] sm:$0xf] }
 0x1d0   :  { %566 = vst [vmem:[#allocation4 + $0x1] sm:$0xff] %v558_v7  ;;  %v526_v29 = vpop.f32.mrf.mxu1  ;;  %v1629_v60 = vor.u32 %v1745_v57, %v1628_v56  ;;  %v1593_v6 = vor.u32 %v1734_v2, %v1590_v3  ;;  %v1743_v7 = vld [vmem:[%s2432_s5 + $0x1a4] sm:$0xf0]  ;;  %v1728_v56 = vld [vmem:[%s2432_s5 + $0x134] sm:$0xf]  ;;  %v1561_v2 = vor.u32 %v1726_v62, %v1558_v63 }
 0x1d1   :  { %v527_v50 = vadd.f32 %v2057_v37, %v526_v29  ;;  %v1621_v10 = vor.u32 %v1743_v7, %v1620_v4  ;;  %v1732_v29 = vld [vmem:[%s2432_s5 + $0x154] sm:$0xf]  ;;  %v1566_v57 = vld [vmem:[%s2432_s5 + $0x138] sm:$0xf0]  ;;  %v593_v7 = vld [vmem:[#allocation5 + $0xc] sm:$0xf] }
 0x1d2   :  { %v542_v19 = vpop.f32.mrf.mxu2  ;;  %1130 = vmatpush.bf16.msrb.mxu3 %v1629_v60  ;;  %1155 = vmatpush.bf16.msra.mxu1 %v1529_v1  ;;  %v1585_v36 = vor.u32 %v1732_v29, %v1582_v32  ;;  %v1710_v60 = vld [vmem:[%s2432_s5 + $0xa4] sm:$0xf]  ;;  %v1708_v3 = vld [vmem:[%s2432_s5 + $0x94] sm:$0xf]  ;;  %v1486_v4 = vld [vmem:[%s2432_s5 + $0x98] sm:$0xf0] }
 0x1d3   :  { %v543_v23 = vadd.f32 %v542_v19, %v524_v17  ;;  %1169 = vmatpush.bf16.msra.mxu2 %v1593_v6  ;;  %v1497_v0 = vor.u32 %v1710_v60, %v1494_v61  ;;  %v1550_v6 = vld [vmem:[%s2432_s5 + $0x118] sm:$0xf0]  ;;  %v1542_v29 = vld [vmem:[%s2432_s5 + $0x108] sm:$0xf0]  ;;  %v1750_v63 = vld [vmem:[%s2432_s5 + $0x1e4] sm:$0xf] }
 0x1d5   :  { %vm551_vm14 = vcmp.gt.f32.partialorder %v543_v23, 0.0  ;;  %v555_v35 = vmul.f32 0.2, %v543_v23 }
 0x1d6   :  { %1131 = vmatpush.bf16.msrb.mxu3 %v1621_v10  ;;  %1156 = vmatpush.bf16.msra.mxu1 %v1521_v31 }
 0x1d7   :  { %v559_v43 = vsel %vm551_vm14, %v543_v23, %v555_v35  ;;  %1170 = vmatpush.bf16.msra.mxu2 %v1585_v36  ;;  %vm1247_vm14 = vcmask 0  }
 0x1d8   :  { %567 = vst [vmem:[#allocation4 + $0x9] sm:$0x7f] %v559_v43  ;;  %v528_v9 = vpop.f32.mrf.mxu1 }
 0x1d9   :  { %568 = vst [vmem:[#allocation4 + $0xa] sm:$0x80] %v559_v43  ;;  %v529_v27 = vadd.f32 %v2057_v37, %v528_v9  ;;  %v1612_v37 = vld [vmem:[%s2432_s5 + $0x190] sm:$0xf]  ;;  %v1417_v43 = vor.u32 %v1690_v39, %v1414_v40 }
 0x1da   :  { %v545_v54 = vpop.f32.mrf.mxu2  ;;  %v1613_v38 = vor.u32 %v1741_v33, %v1612_v37  ;;  %1157 = vmatpush.bf16.msra.mxu1 %v1513_v48 }
 0x1db   :  { %v546_v59 = vadd.f32 %v545_v54, %v527_v50  ;;  %v1739_v50 = vld [vmem:[%s2432_s5 + $0x184] sm:$0xf0]  ;;  %1147 = vmatpush.bf16.msrb.mxu0 %v1417_v43  ;;  %v1502_v54 = vld [vmem:[%s2432_s5 + $0xb8] sm:$0xf0]  ;;  %1171 = vmatpush.bf16.msra.mxu2 %v1577_v15 }
 0x1dc   :  { %1132 = vmatpush.bf16.msrb.mxu3 %v1613_v38  ;;  %v1605_v52 = vor.u32 %v1739_v50, %v1604_v49  ;;  %v1505_v55 = vor.u32 %v1712_v53, %v1502_v54 }
 0x1dd   :  { %vm552_vm15 = vcmp.gt.f32.partialorder %v546_v59, 0.0  ;;  %v556_v5 = vmul.f32 0.2, %v546_v59 }
 0x1de   :  { %1158 = vmatpush.bf16.msra.mxu1 %v1505_v55 }
 0x1df   :  { %v571_v17 = vld [vmem:[#allocation4] ss:$2 sm:$0x7f]  ;;  %v579_v18 = vld [vmem:[#allocation4 + $0x1] ss:$2 sm:$0x7f]  ;;  %v560_v19 = vsel %vm552_vm15, %v546_v59, %v556_v5  ;;  %v1569_v59 = vor.u32 %v1728_v56, %v1566_v57 }
 0x1e0   :  { %v572_v21 = vpack.c.bf16 %v571_v17, %v571_v17  ;;  %v580_v22 = vpack.c.bf16 %v579_v18, %v579_v18  ;;  %v585_v23 = vld [vmem:[#allocation4 + $0x2] ss:$2 sm:$0x7f]  ;;  %569 = vst [vmem:[#allocation4 + $0x12] sm:$0xff] %v560_v19  ;;  %1133 = vmatpush.bf16.msrb.mxu3 %v1605_v52  ;;  %v1724_v5 = vld [vmem:[%s2432_s5 + $0x114] sm:$0xf] }
 0x1e1   :  { %v586_v26 = vpack.c.bf16 %v585_v23, %v585_v23  ;;  %v591_v58 = vld [vmem:[#allocation4 + $0x3] ss:$2 sm:$0x7f]  ;;  %1172 = vmatpush.bf16.msra.mxu2 %v1569_v59  ;;  %v1553_v19 = vor.u32 %v1724_v5, %v1550_v6  ;;  %v1662_v59 = vld [vmem:[%s2432_s5 + $0x1f8] sm:$0xf0] }
 0x1e2   :  { %v547_v30 = vpop.f32.mrf.mxu2  ;;  %v576_v34 = vsel %vm2241_vm1, %v572_v21, %v575_v8  ;;  %v582_v42 = vsel %vm2241_vm1, %v580_v22, %v581_v14  ;;  %v592_v1 = vpack.c.bf16 %v591_v58, %v591_v58  ;;  %1159 = vmatpush.bf16.msra.mxu1 %v1497_v0  ;;  %v1489_v14 = vor.u32 %v1708_v3, %v1486_v4  ;;  %v1478_v21 = vld [vmem:[%s2432_s5 + $0x88] sm:$0xf0]  ;;  %v1722_v22 = vld [vmem:[%s2432_s5 + $0x104] sm:$0xf]  ;;  %v1752_v58 = vld [vmem:[%s2432_s5 + $0x1f4] sm:$0xf] }
 0x1e3   :  { %v548_v35 = vadd.f32 %v547_v30, %v529_v27  ;;  %v588_v46 = vsel %vm2241_vm1, %v586_v26, %v587_v25  ;;  %577 = vst [vmem:[#allocation5] sm:$0xf] %v576_v34  ;;  %v1545_v43 = vor.u32 %v1722_v22, %v1542_v29  ;;  %v1665_v62 = vor.u32 %v1752_v58, %v1662_v59  ;;  %v1654_v3 = vld [vmem:[%s2432_s5 + $0x1e8] sm:$0xf0]  ;;  %v1738_v30 = vld [vmem:[%s2432_s5 + $0x184] sm:$0xf] }
 0x1e4   :  { %583 = vst [vmem:[#allocation5 + $0x4] sm:$0xf] %v582_v42  ;;  %v594_v23 = vsel %vm2241_vm1, %v592_v1, %v593_v7  ;;  %v1481_v42 = vor.u32 %v1706_v20, %v1478_v21 }
 0x1e5   :  { %vm553_vm0 = vcmp.gt.f32.partialorder %v548_v35, 0.0  ;;  %v557_v47 = vmul.f32 0.2, %v548_v35  ;;  %589 = vst [vmem:[#allocation5 + $0x8] sm:$0xf] %v588_v46  ;;  %1173 = vmatpush.bf16.msra.mxu2 %v1561_v2 }
 0x1e6   :  { %1160 = vmatpush.bf16.msra.mxu1 %v1489_v14  ;;  %595 = vst [vmem:[#allocation5 + $0xc] sm:$0xf] %v594_v23  ;;  %v1742_v23 = vld [vmem:[%s2432_s5 + $0x1a4] sm:$0xf] }
 0x1e7   :  { %v561_v51 = vsel %vm553_vm0, %v548_v35, %v557_v47 }
 0x1e8   :  { %570 = vst [vmem:[#allocation4 + $0x1a] sm:$0x3f] %v561_v51 }
 0x1e9   :  { %1174 = vmatpush.bf16.msra.mxu2 %v1553_v19 }
 0x1ea   :  { %v612_v38 = vld [vmem:[#allocation5] sm:$0x8]  ;;  %1161 = vmatpush.bf16.msra.mxu1 %v1481_v42 }
 0x1eb   :  { %v630_v39 = vld [vmem:[#allocation5 + $0x4] sm:$0x8] }
 0x1ec   :  { %v648_v47 = vld [vmem:[#allocation5 + $0x8] sm:$0x8] }
 0x1ed   :  { %1175 = vmatpush.bf16.msra.mxu2 %v1545_v43  ;;  %v666_v55 = vld [vmem:[#allocation5 + $0xc] sm:$0x8] }
 0x1ef   :  { %v597_v8 = vld [vmem:[#allocation4 + $0x10] ss:$2 sm:$0x7f]  ;;  %v617_v9 = vld [vmem:[#allocation4 + $0x11] ss:$2 sm:$0x7f] }
 0x1f0   :  { %v598_v10 = vpack.c.bf16 %v597_v8, %v597_v8  ;;  %v618_v11 = vpack.c.bf16 %v617_v9, %v617_v9  ;;  %v635_v12 = vld [vmem:[#allocation4 + $0x12] ss:$2 sm:$0x7f]  ;;  %v653_v13 = vld [vmem:[#allocation4 + $0x13] ss:$2 sm:$0x7f]  ;;  %v1657_v8 = vor.u32 %v1750_v63, %v1654_v3 }
 0x1f1   :  { %v636_v17 = vpack.c.bf16 %v635_v12, %v635_v12  ;;  %v654_v18 = vpack.c.bf16 %v653_v13, %v653_v13  ;;  %v1748_v9 = vld [vmem:[%s2432_s5 + $0x1d4] sm:$0xf]  ;;  %v1746_v12 = vld [vmem:[%s2432_s5 + $0x1c4] sm:$0xf]  ;;  %v1638_v13 = vld [vmem:[%s2432_s5 + $0x1c8] sm:$0xf0] }
 0x1f2   :  { %v620_v25 = vshll.u32 %v618_v11, 16  ;;  %v623_v26 = vshrl.u32 %v618_v11, 16  ;;  %v600_v27 = vshll.u32 %v598_v10, 16  ;;  %v603_v28 = vshrl.u32 %v598_v10, 16  ;;  %v1646_v10 = vld [vmem:[%s2432_s5 + $0x1d8] sm:$0xf0] }
 0x1f3   :  { %v638_v31 = vshll.u32 %v636_v17, 16  ;;  %v641_v32 = vshrl.u32 %v636_v17, 16  ;;  %v656_v37 = vshll.u32 %v654_v18, 16  ;;  %v659_v33 = vshrl.u32 %v654_v18, 16  ;;  %v1744_v17 = vld [vmem:[%s2432_s5 + $0x1b4] sm:$0xf] }
 0x1f4   :  { %v602_v16 = vrot.slane %v600_v27, 5  ;;  %v605_v34 = vrot.slane %v603_v28, 4  ;;  %v622_v35 = vrot.slane %v620_v25, 5  ;;  %v625_v36 = vrot.slane %v623_v26, 4  ;;  %v1630_v18 = vld [vmem:[%s2432_s5 + $0x1b8] sm:$0xf0] }
 0x1f5   :  { %v640_v40 = vrot.slane %v638_v31, 5  ;;  %v643_v41 = vrot.slane %v641_v32, 4  ;;  %v658_v49 = vrot.slane %v656_v37, 5  ;;  %v661_v52 = vrot.slane %v659_v33, 4  ;;  %v1622_v25 = vld [vmem:[%s2432_s5 + $0x1a8] sm:$0xf0] }
 0x1f6   :  { %v606_v44 = vor.u32 %v605_v34, %v602_v16  ;;  %v613_v45 = vsel %vm2343_vm2, %v602_v16, %v612_v38  ;;  %v626_v24 = vor.u32 %v625_v36, %v622_v35  ;;  %v631_v46 = vsel %vm2343_vm2, %v622_v35, %v630_v39  ;;  %v1740_v27 = vld [vmem:[%s2432_s5 + $0x194] sm:$0xf]  ;;  %v1614_v28 = vld [vmem:[%s2432_s5 + $0x198] sm:$0xf0]  ;;  %v1606_v31 = vld [vmem:[%s2432_s5 + $0x188] sm:$0xf0] }
 0x1f7   :  { %614 = vst [vmem:[#allocation5] sm:$0x8] %v613_v45  ;;  %v644_v48 = vor.u32 %v643_v41, %v640_v40  ;;  %v649_v15 = vsel %vm2343_vm2, %v640_v40, %v648_v47  ;;  %v662_v54 = vor.u32 %v661_v52, %v658_v49  ;;  %v667_v57 = vsel %vm2343_vm2, %v658_v49, %v666_v55  ;;  %v738_v35 = vld [vmem:[%s2433_s6] sm:$0x3] }
 0x1f8   :  { %v607_v50 = vrot.slane %v606_v44, 4  ;;  %v627_v51 = vrot.slane %v626_v24, 4  ;;  %632 = vst [vmem:[#allocation5 + $0x4] sm:$0x8] %v631_v46  ;;  %v1649_v11 = vor.u32 %v1748_v9, %v1646_v10  ;;  %v1641_v14 = vor.u32 %v1746_v12, %v1638_v13 }
 0x1f9   :  { %v645_v53 = vrot.slane %v644_v48, 4  ;;  %650 = vst [vmem:[#allocation5 + $0x8] sm:$0x8] %v649_v15  ;;  %v663_v56 = vrot.slane %v662_v54, 4  ;;  %v1633_v21 = vor.u32 %v1744_v17, %v1630_v18  ;;  %v1625_v26 = vor.u32 %v1742_v23, %v1622_v25 }
 0x1fa   :  { %615 = vst [vmem:[#allocation5 + $0x10] sm:$0x7] %v607_v50  ;;  %v1617_v29 = vor.u32 %v1740_v27, %v1614_v28  ;;  %v1609_v32 = vor.u32 %v1738_v30, %v1606_v31  ;;  %v740_v36 = vperm.slane %v738_v35, 0  ;;  %v741_v44 = vperm.slane %v738_v35, 1 }
 0x1fb   :  { %633 = vst [vmem:[#allocation5 + $0x14] sm:$0x7] %v627_v51 }
 0x1fc   :  { %651 = vst [vmem:[#allocation5 + $0x18] sm:$0x7] %v645_v53  ;;  %v1208_v53 = vld [vmem:[%s2434_s7] sm:$0x7f] }
 0x1fd   :  { %668 = vst [vmem:[#allocation5 + $0xc] sm:$0x8] %v667_v57  ;;  %v1251_v59 = vrot.slane %v1208_v53, 1 }
 0x1fe   :  { %669 = vst [vmem:[#allocation5 + $0x1c] sm:$0x7] %v663_v56  ;;  %v1396_v60 = vld [vmem:[#allocation5] sm:$0xf]  ;;  %v1209_v56 = vld [vmem:[%s2434_s7 + $0x8] sm:$0x7f] }
 0x1ff   :  { %v1686_v1 = vld [vmem:[#allocation5 + $0x4] sm:$0xf] }
 0x200   :  { %v1404_v5 = vld [vmem:[#allocation5 + $0x8] sm:$0xf] }
 0x201   :  { %v1688_v61 = vld [vmem:[#allocation5 + $0xc] sm:$0x70] }
 0x202   :  { %v1397_v0 = vor.u32 %v1688_v61, %v1396_v60  ;;  %v1398_v2 = vld [vmem:[#allocation5 + $0x10] sm:$0x70] }
 0x203   :  { %v1401_v4 = vor.u32 %v1686_v1, %v1398_v2  ;;  %v1689_v6 = vld [vmem:[#allocation5 + $0x14] sm:$0x70] }
 0x204   :  { %1092 = vmatmul.bf16.vlgmr.msra.gmra.mxu3 %v1397_v0  ;;  %v1405_v7 = vor.u32 %v1689_v6, %v1404_v5  ;;  %1148 = vmatmul.bf16.vlgmr.msrb.gmra.mxu0 %v1397_v0  ;;  %v1687_v20 = vld [vmem:[#allocation5 + $0xc] sm:$0xf]  ;;  %v1252_v0 = vrot.slane %v1209_v56, 1 }
 0x205   :  { %1106 = vmatmul.bf16.vlgmr.msrb.gmra.mxu1 %v1401_v4  ;;  %1182 = vmatpush.bf16.msra.mxu3 %v1665_v62  ;;  %v1406_v19 = vld [vmem:[#allocation5 + $0x18] sm:$0x70] }
 0x206   :  { %1120 = vmatmul.bf16.vlgmr.msrb.gmra.mxu2 %v1405_v7  ;;  %v1409_v22 = vor.u32 %v1687_v20, %v1406_v19 }
 0x209   :  { %1183 = vmatpush.bf16.msra.mxu3 %v1657_v8 }
 0x20d   :  { %1184 = vmatpush.bf16.msra.mxu3 %v1649_v11 }
 0x211   :  { %1185 = vmatpush.bf16.msra.mxu3 %v1641_v14 }
 0x214   :  { %1134 = vmatmul.bf16.vlgmr.msrb.gmra.mxu3 %v1409_v22 }
 0x215   :  { %1162 = vmatmul.bf16.vlgmr.msra.gmra.mxu1 %v1401_v4  ;;  %1186 = vmatpush.bf16.msra.mxu3 %v1633_v21 }
 0x216   :  { %1176 = vmatmul.bf16.vlgmr.msra.gmra.mxu2 %v1405_v7 }
 0x219   :  { %1187 = vmatpush.bf16.msra.mxu3 %v1625_v26 }
 0x21d   :  { %1188 = vmatpush.bf16.msra.mxu3 %v1617_v29 }
 0x221   :  { %1189 = vmatpush.bf16.msra.mxu3 %v1609_v32 }
 0x224   :  { %1190 = vmatmul.bf16.vlgmr.msra.gmra.mxu3 %v1409_v22 }
 0x281   :  { %v1149_v43 = vpop.f32.mrf.mxu0 }
 0x282   :  { %v1107_v33 = vpop.f32.mrf.mxu1  ;;  %v1150_v49 = vadd.f32 %v1149_v43, %v741_v44 }
 0x287   :  { %v1093_v37 = vpop.f32.mrf.mxu3 }
 0x288   :  { %v1094_v39 = vadd.f32 %v1093_v37, %v740_v36 }
 0x289   :  { %v1121_v16 = vpop.f32.mrf.mxu2  ;;  %v1151_v57 = vpop.f32.mrf.mxu0 }
 0x28a   :  { %v1109_v38 = vpop.f32.mrf.mxu1  ;;  %v1108_v42 = vadd.f32 %v1107_v33, %v1094_v39  ;;  %v1152_v1 = vadd.f32 %v1151_v57, %v741_v44 }
 0x28c   :  { %v1122_v45 = vadd.f32 %v1121_v16, %v1108_v42 }
 0x28f   :  { %v1095_v34 = vpop.f32.mrf.mxu3 }
 0x290   :  { %v1096_v24 = vadd.f32 %v1095_v34, %v740_v36 }
 0x291   :  { %v1123_v40 = vpop.f32.mrf.mxu2 }
 0x292   :  { %v1163_v46 = vpop.f32.mrf.mxu1  ;;  %v1110_v50 = vadd.f32 %v1109_v38, %v1096_v24 }
 0x293   :  { %v1164_v51 = vadd.f32 %v1163_v46, %v1150_v49 }
 0x294   :  { %v1124_v54 = vadd.f32 %v1123_v40, %v1110_v50 }
 0x297   :  { %v1135_v41 = vpop.f32.mrf.mxu3 }
 0x298   :  { %v1136_v48 = vadd.f32 %v1135_v41, %v1122_v45  ;;  %v1226_v41 = vstv %s2435_s8 }
 0x299   :  { %v1177_v15 = vpop.f32.mrf.mxu2 }
 0x29a   :  { %v1200_v52 = vmul.f32 0.2, %v1136_v48  ;;  %vm1196_vm3 = vcmp.gt.f32.partialorder %v1136_v48, 0.0  ;;  %v1178_v55 = vadd.f32 %v1177_v15, %v1164_v51  ;;  %v1165_v63 = vpop.f32.mrf.mxu1 }
 0x29b   :  { %v1166_v6 = vadd.f32 %v1165_v63, %v1152_v1 }
 0x29c   :  { %v1204_v60 = vsel %vm1196_vm3, %v1136_v48, %v1200_v52 }
 0x29d   :  { %v1255_v4 = vmul.f32 %v1251_v59, %v1204_v60  ;;  %v1211_v5 = vmul.f32 %v1208_v53, %v1204_v60 }
 0x29f   :  { %v1137_v47 = vpop.f32.mrf.mxu3  ;;  %v1260_v13 = vsel %vm1259_vm5, %v1255_v4, 0.0  ;;  %v1214_v17 = vsel %vm1213_vm6, %v1211_v5, 0.0 }
 0x2a0   :  { %v1138_v61 = vadd.f32 %v1137_v47, %v1124_v54 }
 0x2a1   :  { %v1179_v3 = vpop.f32.mrf.mxu2 }
 0x2a2   :  { %v1202_v7 = vmul.f32 0.2, %v1138_v61  ;;  %vm1198_vm7 = vcmp.gt.f32.partialorder %v1138_v61, 0.0  ;;  %v1180_v11 = vadd.f32 %v1179_v3, %v1166_v6 }
 0x2a4   :  { %v1206_v19 = vsel %vm1198_vm7, %v1138_v61, %v1202_v7 }
 0x2a5   :  { %v1257_v25 = vmul.f32 %v1251_v59, %v1206_v19 }
 0x2a7   :  { %v1191_v58 = vpop.f32.mrf.mxu3  ;;  %v1266_v28 = vsel %vm1265_vm9, %v1257_v25, 0.0 }
 0x2a8   :  { %v1192_v62 = vadd.f32 %v1191_v58, %v1178_v55 }
 0x2aa   :  { %vm1197_vm4 = vcmp.gt.f32.partialorder %v1192_v62, 0.0  ;;  %v1201_v2 = vmul.f32 0.2, %v1192_v62 }
 0x2ac   :  { %v1205_v8 = vsel %vm1197_vm4, %v1192_v62, %v1201_v2 }
 0x2ad   :  { %v1256_v9 = vmul.f32 %v1252_v0, %v1205_v8  ;;  %v1212_v10 = vmul.f32 %v1209_v56, %v1205_v8 }
 0x2af   :  { %v1193_v12 = vpop.f32.mrf.mxu3  ;;  %v1261_v14 = vsel %vm1259_vm5, %v1256_v9, 0.0  ;;  %v1215_v18 = vsel %vm1213_vm6, %v1212_v10, 0.0 }
 0x2b0   :  { %v1194_v20 = vadd.f32 %v1193_v12, %v1180_v11  ;;  %v1262_v21 = vadd.f32 %v1261_v14, %v1260_v13  ;;  %v1216_v22 = vadd.f32 %v1215_v18, %v1214_v17 }
 0x2b2   :  { %vm1199_vm8 = vcmp.gt.f32.partialorder %v1194_v20, 0.0  ;;  %v1203_v23 = vmul.f32 0.2, %v1194_v20  ;;  %1263 = vadd.xlane.f32.xlu0 %v1262_v21  ;;  %1217 = vadd.xlane.f32.xlu2 %v1216_v22 }
 0x2b4   :  { %v1207_v26 = vsel %vm1199_vm8, %v1194_v20, %v1203_v23 }
 0x2b5   :  { %v1258_v27 = vmul.f32 %v1252_v0, %v1207_v26 }
 0x2b7   :  { %v1267_v29 = vsel %vm1265_vm9, %v1258_v27, 0.0 }
 0x2b8   :  { %v1268_v30 = vadd.f32 %v1267_v29, %v1266_v28 }
 0x2ba   :  { %1269 = vadd.xlane.f32.xlu1 %v1268_v30 }
 0x325   :  { %v1218_v31 = vpop.xlane.xlu2 %1217  ;;  %v1264_v16 = vpop.xlane.xlu0 %1263 }
 0x326   :  { %v1219_v32 = vsel %vm1213_vm6, %v1218_v31, 0.0  ;;  %v1274_v38 = vrot.slane %v1264_v16, 7 }
 0x327   :  { %v1220_v37 = vrot.slane %v1219_v32, 4 }
 0x329   :  { %v1221_v33 = vadd.f32 %v1220_v37, %v1219_v32 }
 0x32b   :  { %v1222_v34 = vrot.slane %v1221_v33, 2 }
 0x32d   :  { %v1223_v35 = vadd.f32 %v1222_v34, %v1221_v33  ;;  %v1270_v36 = vpop.xlane.xlu1 %1269 }
 0x32e   :  { %v1275_v39 = vrot.slane %v1270_v36, 7 }
 0x32f   :  { %v1224_v40 = vrot.slane %v1223_v35, 1 }
 0x330   :  { %v1276_v42 = vsel %vm1273_vm11, %v1274_v38, %v1275_v39 }
 0x331   :  { %v1225_v43 = vadd.f32 %v1224_v40, %v1223_v35  ;;  %v1278_v44 = vsel %vm1213_vm6, %v1276_v42, 0.0 }
 0x332   :  { %v1279_v45 = vrot.slane %v1278_v44, 4 }
 0x333   :  { %v1227_v24 = vadd.f32 %v1226_v41, %v1225_v43 }
 0x334   :  { %v1280_v46 = vadd.f32 %v1279_v45, %v1278_v44 }
 0x335   :  { %v1228_v47 = vsub.f32 0.0, %v1227_v24 }
 0x336   :  { %v1281_v48 = vrot.slane %v1280_v46, 2 }
 0x337   :  { %v1229_v15 = vmul.f32 1.442695, %v1228_v47 }
 0x338   :  { %v1282_v49 = vadd.f32 %v1281_v48, %v1280_v46 }
 0x339   :  { %1763 = vpow2.f32 %v1229_v15 }
 0x33a   :  { %v1283_v50 = vrot.slane %v1282_v49, 1 }
 0x33c   :  { %v1284_v51 = vadd.f32 %v1283_v50, %v1282_v49 }
 0x33e   :  { %v1285_v52 = vadd.f32 %v1284_v51, %v1226_v41 }
 0x33f   :  { %v1764_v53 = vpop.eup %1763 }
 0x340   :  { %v1231_v54 = vadd.f32 1.0, %v1764_v53  ;;  %v1286_v55 = vsub.f32 0.0, %v1285_v52 }
 0x342   :  { %1765 = vrcp.f32 %v1231_v54  ;;  %v1287_v56 = vmul.f32 1.442695, %v1286_v55  ;;  %v1243_v61 = vand.u32 2147483648, %v1231_v54  ;;  %v1241_v0 = vand.u32 2147483647, %v1231_v54 }
 0x343   :  { %vm1237_vm13 = vweird.f32 %v1231_v54 }
 0x344   :  { %1767 = vpow2.f32 %v1287_v56  ;;  %v1244_v2 = vor.u32 1.1754944e-38, %v1243_v61  ;;  %vm1242_vm1 = vcmp.eq.f32.partialorder %v1241_v0, 8.507059e+37 }
 0x348   :  { %v1766_v57 = vpop.eup %1765 }
 0x349   :  { %v1233_v58 = vmul.f32 %v1766_v57, %v1231_v54  ;;  %vm1238_vm12 = vweird.f32 %v1766_v57 }
 0x34a   :  { %v1768_v59 = vpop.eup %1767  ;;  %vm1239_vm15 = vmor %vm1237_vm13, %vm1238_vm12 }
 0x34b   :  { %v1234_v60 = vsub.f32 1.0, %v1233_v58  ;;  %v1289_v62 = vadd.f32 1.0, %v1768_v59 }
 0x34d   :  { %v1235_v63 = vmul.f32 %v1766_v57, %v1234_v60  ;;  %1769 = vrcp.f32 %v1289_v62  ;;  %v1301_v8 = vand.u32 2147483648, %v1289_v62  ;;  %v1299_v10 = vand.u32 2147483647, %v1289_v62 }
 0x34e   :  { %vm1295_vm10 = vweird.f32 %v1289_v62 }
 0x34f   :  { %v1236_v1 = vadd.f32 %v1766_v57, %v1235_v63  ;;  %v1302_v12 = vor.u32 1.1754944e-38, %v1301_v8  ;;  %vm1300_vm3 = vcmp.eq.f32.partialorder %v1299_v10, 8.507059e+37 }
 0x351   :  { %v1240_v3 = vsel %vm1239_vm15, %v1766_v57, %v1236_v1 }
 0x352   :  { %v1245_v4 = vsel %vm1242_vm1, %v1244_v2, %v1240_v3 }
 0x353   :  { %1248 = vst.msk [vmem:[%s2436_s9] sm:$0x1] %vm1247_vm14, %v1245_v4  ;;  %v1770_v5 = vpop.eup %1769 }
 0x354   :  { %v1291_v6 = vmul.f32 %v1770_v5, %v1289_v62  ;;  %vm1296_vm0 = vweird.f32 %v1770_v5 }
 0x355   :  { %vm1297_vm2 = vmor %vm1295_vm10, %vm1296_vm0 }
 0x356   :  { %v1292_v7 = vsub.f32 1.0, %v1291_v6 }
 0x358   :  { %v1293_v9 = vmul.f32 %v1770_v5, %v1292_v7 }
 0x35a   :  { %v1294_v11 = vadd.f32 %v1770_v5, %v1293_v9 }
 0x35c   :  { %v1298_v13 = vsel %vm1297_vm2, %v1770_v5, %v1294_v11 }
 0x35d   :  { %v1303_v14 = vsel %vm1300_vm3, %v1302_v12, %v1298_v13 }
 0x35e   :  { %1305 = vst.msk [vmem:[%s2436_s9 + $0x1] sm:$0x1] %vm1247_vm14, %v1303_v14 }

</bundles_post_ra>
